<compile_context>
chip_gen: v7x
topology: tpu7x:2x2x1
jax: 0.10.0
libtpu: 0.0.40
codegen_flags: <defaults>
</compile_context>

<pallas_src>
import functools

import jax
import jax.numpy as jnp
from jax.experimental import pallas as pl
from jax.experimental.pallas import tpu as pltpu


def _round_up(x, m):
    return (x + m - 1) // m * m


def _pick_tile(n, target):
    """Largest divisor of n that is <= target (>= 1)."""
    t = max(1, min(n, target))
    while n % t:
        t -= 1
    return t


def _conv_bn_relu_kernel(x_ref, w_ref, shift_ref, o_ref, *,
                         kh, kw, stride, th, ow_p):
    """Direct NHWC conv + fused BN shift + ReLU for one (batch, OC-tile, OH-tile).

    x_ref:     (1, HP, WP, C)       padded input image (resident per batch elem)
    w_ref:     (KH*KW, C, OCt)      weight tile, BN scale folded in
    shift_ref: (1, OCt)             BN shift tile (f32)
    o_ref:     (1, TH, OWp, OCt)    bf16 output tile (OWp mult of 8, OCt of 128)
    """
    oh_i = pl.program_id(2)                       # OH-tile index (innermost axis)
    c = x_ref.shape[-1]
    oct_ = o_ref.shape[-1]
    m = th * ow_p

    # First output row handled by this tile (in padded-input row coordinates).
    row0 = pl.multiple_of(oh_i * (th * stride), th * stride)

    acc = jnp.zeros((m, oct_), dtype=jnp.float32)
    # KH*KW taps: each is an (M, C) x (C, OCt) MXU matmul accumulated in f32.
    # OWp is a multiple of 8, so the (TH, OWp, C) -> (M, C) flatten is a
    # layout-preserving merge (no relayout copy) -- review item #1.
    for i in range(kh):
        for j in range(kw):
            if stride == 1:
                win = x_ref[0, pl.ds(row0 + i, th), pl.ds(j, ow_p), :]
            else:
                win = x_ref[0, pl.ds(row0 + i, th, stride),
                            pl.ds(j, ow_p, stride), :]
            acc += jnp.dot(win.reshape(m, c), w_ref[i * kw + j],
                           preferred_element_type=jnp.float32)

    y = jnp.maximum(acc + shift_ref[...], 0.0)    # BN shift + ReLU in f32 vregs
    o_ref[...] = y.reshape(1, th, ow_p, oct_).astype(o_ref.dtype)


@functools.partial(jax.jit,
                   static_argnames=("stride", "pad", "eps", "compute_dtype"))
def basic_conv2d(x, weight, gamma, beta, running_mean, running_var,
                 *, stride=1, pad=1, eps=1e-5, compute_dtype=jnp.bfloat16):
    """Forward of BasicConv2d. x: [N, C, H, W] (NCHW), weight: [OC, C, KH, KW]."""
    n, c, h, w = x.shape
    oc, _, kh, kw = weight.shape
    oh = (h + 2 * pad - kh) // stride + 1
    ow = (w + 2 * pad - kw) // stride + 1

    # ---- BN (eval mode) folded into a weight scale + per-channel shift ----
    scale = gamma / jnp.sqrt(running_var + eps)                       # (OC,)
    shift = beta - running_mean * scale                               # (OC,)

    # ---- OC padding / tiling: lane-dense, 256-wide tiles for large layers
    # (matches v6e/v7x 256-wide MXU; 128 keeps the v5e 128x128 MXU full). ----
    if oc > 128:
        ocp = _round_up(oc, 256)
        oc_tile = 256
    else:
        ocp = 128
        oc_tile = 128

    # ---- OW padded to a sublane multiple so the in-kernel flatten is free ----
    ow_p = _round_up(ow, 8)

    # ---- OH tile: keep the f32 accumulator <= ~128 KiB, and make sure there
    # are >= 2 OH tiles so the pipeline / megacore have something to split. ----
    max_th = max(1, (128 * 1024 // 4) // (ow_p * oc_tile))
    if oh >= 16:
        max_th = min(max_th, oh // 2)
    th = _pick_tile(oh, max_th)

    # ---- Weights: (OC, C, KH, KW) -> (KH*KW, C, OCp), BN scale folded ----
    w_f = (weight * scale[:, None, None, None]).transpose(2, 3, 1, 0)  # (KH,KW,C,OC)
    w_f = w_f.reshape(kh * kw, c, oc)
    w_f = jnp.pad(w_f, ((0, 0), (0, 0), (0, ocp - oc))).astype(compute_dtype)
    shift_p = jnp.pad(shift, (0, ocp - oc)).reshape(1, ocp).astype(jnp.float32)

    # ---- Input: NCHW -> NHWC once, single spatial pad (conv pad + a few extra
    # zero columns so the OWp-wide windows stay in bounds).  No im2col. ----
    x_nhwc = jnp.transpose(x, (0, 2, 3, 1)).astype(compute_dtype)
    wp_needed = (ow_p - 1) * stride + kw
    extra_w = max(0, wp_needed - (w + 2 * pad))
    x_p = jnp.pad(x_nhwc, ((0, 0), (pad, pad), (pad, pad + extra_w), (0, 0)))
    hp, wp = h + 2 * pad, w + 2 * pad + extra_w

    kernel = functools.partial(_conv_bn_relu_kernel,
                               kh=kh, kw=kw, stride=stride, th=th, ow_p=ow_p)

    itemsize = jnp.dtype(compute_dtype).itemsize
    cost = pl.CostEstimate(
        flops=2 * n * oh * ow * kh * kw * c * oc,
        transcendentals=0,
        bytes_accessed=int(n * hp * wp * c * itemsize        # input read (once/batch)
                           + kh * kw * c * ocp * itemsize    # weights
                           + ocp * 4                         # shift
                           + n * oh * ow_p * ocp * itemsize))  # bf16 output write

    out = pl.pallas_call(
        kernel,
        out_shape=jax.ShapeDtypeStruct((n, oh, ow_p, ocp), compute_dtype),
        grid_spec=pltpu.PrefetchScalarGridSpec(
            num_scalar_prefetch=0,
            grid=(n, ocp // oc_tile, oh // th),
            in_specs=[
                # Full padded image; block index constant across OC/OH axes ->
                # fetched from HBM once per batch element, stays resident.
                pl.BlockSpec((1, hp, wp, c), lambda b, jc, ih: (b, 0, 0, 0)),
                # Folded weights / BN shift: one OC tile, resident across OH.
                pl.BlockSpec((kh * kw, c, oc_tile), lambda b, jc, ih: (0, 0, jc)),
                pl.BlockSpec((1, oc_tile), lambda b, jc, ih: (0, jc)),
            ],
            out_specs=pl.BlockSpec((1, th, ow_p, oc_tile),
                                   lambda b, jc, ih: (b, ih, 0, jc)),
        ),
        # All three axes are independent -> shard across TensorCores on v7x.
        # Per-step blocks (bf16 image + weight tile + bf16 output tile) are
        # well inside v5e's 16 MiB default scoped VMEM and v7x's 64 MiB
        # physical VMEM even with double buffering, so no vmem_limit override.
        compiler_params=pltpu.CompilerParams(
            dimension_semantics=("parallel", "parallel", "parallel")),
        cost_estimate=cost,
    )(x_p, w_f, shift_p)

    # Drop OW/OC padding; convert back to the module's NCHW f32 interface.
    return jnp.transpose(out[:, :, :ow, :oc], (0, 3, 1, 2)).astype(jnp.float32)


if __name__ == "__main__":
    # Small shapes consistent with the module: N=2, C_in=4, H=W=16,
    # Conv2d(4, 8, kernel_size=3, padding=1, bias=False).
    N, C_IN, H, W = 2, 4, 16, 16
    C_OUT, KH, KW = 8, 3, 3

    key = jax.random.PRNGKey(0)
    kx, kw_, kg, kb, km, kv = jax.random.split(key, 6)

    x = jax.random.normal(kx, (N, C_IN, H, W), dtype=jnp.float32)
    weight = jax.random.normal(kw_, (C_OUT, C_IN, KH, KW), dtype=jnp.float32) * 0.1
    gamma = 1.0 + 0.1 * jax.random.normal(kg, (C_OUT,), dtype=jnp.float32)
    beta = 0.1 * jax.random.normal(kb, (C_OUT,), dtype=jnp.float32)
    running_mean = 0.1 * jax.random.normal(km, (C_OUT,), dtype=jnp.float32)
    running_var = 1.0 + 0.1 * jnp.abs(jax.random.normal(kv, (C_OUT,), dtype=jnp.float32))

    y = basic_conv2d(x, weight, gamma, beta, running_mean, running_var,
                     stride=1, pad=1)
    y = jax.block_until_ready(y)

    assert y.shape == (N, C_OUT, H, W), y.shape
    assert bool(jnp.all(y >= 0.0))  # ReLU post-condition

    # Reference check (pure XLA, f32) — tolerance accounts for bf16 MXU feed
    # and bf16 output writeback.
    ref = jax.lax.conv_general_dilated(
        x, weight, window_strides=(1, 1), padding=((1, 1), (1, 1)),
        dimension_numbers=("NCHW", "OIHW", "NCHW"))
    rscale = gamma / jnp.sqrt(running_var + 1e-5)
    ref = ref * rscale[None, :, None, None] \
        + (beta - running_mean * rscale)[None, :, None, None]
    ref = jnp.maximum(ref, 0.0)
    err = float(jnp.max(jnp.abs(y - ref)))
    assert jnp.allclose(y, ref, atol=5e-2, rtol=5e-2), err

    print("KERNEL_OK")
</pallas_src>

<mosaic_0001>
module attributes {stable_mosaic.version = 11 : i64} {
  func.func @_conv_bn_relu_kernel(%arg0: i32, %arg1: i32, %arg2: i32, %arg3: memref<1x18x18x4xbf16, #tpu.memory_space<vmem>>, %arg4: memref<9x4x128xbf16, #tpu.memory_space<vmem>>, %arg5: memref<1x128xf32, #tpu.memory_space<vmem>>, %arg6: memref<1x8x16x128xbf16, #tpu.memory_space<vmem>>) attributes {dimension_semantics = [#tpu.dimension_semantics<parallel>, #tpu.dimension_semantics<parallel>, #tpu.dimension_semantics<parallel>], iteration_bounds = array<i64: 2, 1, 2>, scalar_prefetch = 0 : i64, scratch_operands = 0 : i64, tpu.core_type = #tpu.core_type<tc>, window_params = [{transform_indices = @transform_0, window_bounds = array<i64: 1, 18, 18, 4>}, {transform_indices = @transform_1, window_bounds = array<i64: 9, 4, 128>}, {transform_indices = @transform_2, window_bounds = array<i64: 1, 128>}, {transform_indices = @transform_3, window_bounds = array<i64: 1, 8, 16, 128>}]} {
    %c8_i32 = arith.constant 8 : i32
    %0 = arith.muli %arg2, %c8_i32 : i32
    %1 = tpu.assume_multiple %0, 8 : i32
    %cst = arith.constant 0.000000e+00 : f32
    %2 = vector.broadcast %cst : f32 to vector<128x128xf32>
    %c0_i32 = arith.constant 0 : i32
    %3 = arith.addi %1, %c0_i32 : i32
    %c0 = arith.constant 0 : index
    %4 = arith.index_cast %3 : i32 to index
    %c0_0 = arith.constant 0 : index
    %c0_1 = arith.constant 0 : index
    %5 = vector.load %arg3[%c0, %4, %c0_0, %c0_1] : memref<1x18x18x4xbf16, #tpu.memory_space<vmem>>, vector<1x8x16x4xbf16>
    %6 = vector.shape_cast %5 : vector<1x8x16x4xbf16> to vector<8x16x4xbf16>
    %7 = vector.shape_cast %6 : vector<8x16x4xbf16> to vector<128x4xbf16>
    %c0_2 = arith.constant 0 : index
    %c0_3 = arith.constant 0 : index
    %c0_4 = arith.constant 0 : index
    %8 = vector.load %arg4[%c0_2, %c0_3, %c0_4] : memref<9x4x128xbf16, #tpu.memory_space<vmem>>, vector<1x4x128xbf16>
    %9 = vector.shape_cast %8 : vector<1x4x128xbf16> to vector<4x128xbf16>
    %cst_5 = arith.constant dense<0.000000e+00> : vector<128x128xf32>
    %10 = tpu.matmul %7, %9, %cst_5 {dimension_numbers = #tpu.dot_dimension_numbers<[1], [0], [0], [1], [0, 0, 1, 1], [], []>} : vector<128x4xbf16>, vector<4x128xbf16>, vector<128x128xf32> -> vector<128x128xf32>
    %11 = arith.addf %2, %10 : vector<128x128xf32>
    %c0_i32_6 = arith.constant 0 : i32
    %12 = arith.addi %1, %c0_i32_6 : i32
    %c0_7 = arith.constant 0 : index
    %13 = arith.index_cast %12 : i32 to index
    %c1 = arith.constant 1 : index
    %c0_8 = arith.constant 0 : index
    %14 = vector.load %arg3[%c0_7, %13, %c1, %c0_8] : memref<1x18x18x4xbf16, #tpu.memory_space<vmem>>, vector<1x8x16x4xbf16>
    %15 = vector.shape_cast %14 : vector<1x8x16x4xbf16> to vector<8x16x4xbf16>
    %16 = vector.shape_cast %15 : vector<8x16x4xbf16> to vector<128x4xbf16>
    %c1_9 = arith.constant 1 : index
    %c0_10 = arith.constant 0 : index
    %c0_11 = arith.constant 0 : index
    %17 = vector.load %arg4[%c1_9, %c0_10, %c0_11] : memref<9x4x128xbf16, #tpu.memory_space<vmem>>, vector<1x4x128xbf16>
    %18 = vector.shape_cast %17 : vector<1x4x128xbf16> to vector<4x128xbf16>
    %cst_12 = arith.constant dense<0.000000e+00> : vector<128x128xf32>
    %19 = tpu.matmul %16, %18, %cst_12 {dimension_numbers = #tpu.dot_dimension_numbers<[1], [0], [0], [1], [0, 0, 1, 1], [], []>} : vector<128x4xbf16>, vector<4x128xbf16>, vector<128x128xf32> -> vector<128x128xf32>
    %20 = arith.addf %11, %19 : vector<128x128xf32>
    %c0_i32_13 = arith.constant 0 : i32
    %21 = arith.addi %1, %c0_i32_13 : i32
    %c0_14 = arith.constant 0 : index
    %22 = arith.index_cast %21 : i32 to index
    %c2 = arith.constant 2 : index
    %c0_15 = arith.constant 0 : index
    %23 = vector.load %arg3[%c0_14, %22, %c2, %c0_15] : memref<1x18x18x4xbf16, #tpu.memory_space<vmem>>, vector<1x8x16x4xbf16>
    %24 = vector.shape_cast %23 : vector<1x8x16x4xbf16> to vector<8x16x4xbf16>
    %25 = vector.shape_cast %24 : vector<8x16x4xbf16> to vector<128x4xbf16>
    %c2_16 = arith.constant 2 : index
    %c0_17 = arith.constant 0 : index
    %c0_18 = arith.constant 0 : index
    %26 = vector.load %arg4[%c2_16, %c0_17, %c0_18] : memref<9x4x128xbf16, #tpu.memory_space<vmem>>, vector<1x4x128xbf16>
    %27 = vector.shape_cast %26 : vector<1x4x128xbf16> to vector<4x128xbf16>
    %cst_19 = arith.constant dense<0.000000e+00> : vector<128x128xf32>
    %28 = tpu.matmul %25, %27, %cst_19 {dimension_numbers = #tpu.dot_dimension_numbers<[1], [0], [0], [1], [0, 0, 1, 1], [], []>} : vector<128x4xbf16>, vector<4x128xbf16>, vector<128x128xf32> -> vector<128x128xf32>
    %29 = arith.addf %20, %28 : vector<128x128xf32>
    %c1_i32 = arith.constant 1 : i32
    %30 = arith.addi %1, %c1_i32 : i32
    %c0_20 = arith.constant 0 : index
    %31 = arith.index_cast %30 : i32 to index
    %c0_21 = arith.constant 0 : index
    %c0_22 = arith.constant 0 : index
    %32 = vector.load %arg3[%c0_20, %31, %c0_21, %c0_22] : memref<1x18x18x4xbf16, #tpu.memory_space<vmem>>, vector<1x8x16x4xbf16>
    %33 = vector.shape_cast %32 : vector<1x8x16x4xbf16> to vector<8x16x4xbf16>
    %34 = vector.shape_cast %33 : vector<8x16x4xbf16> to vector<128x4xbf16>
    %c3 = arith.constant 3 : index
    %c0_23 = arith.constant 0 : index
    %c0_24 = arith.constant 0 : index
    %35 = vector.load %arg4[%c3, %c0_23, %c0_24] : memref<9x4x128xbf16, #tpu.memory_space<vmem>>, vector<1x4x128xbf16>
    %36 = vector.shape_cast %35 : vector<1x4x128xbf16> to vector<4x128xbf16>
    %cst_25 = arith.constant dense<0.000000e+00> : vector<128x128xf32>
    %37 = tpu.matmul %34, %36, %cst_25 {dimension_numbers = #tpu.dot_dimension_numbers<[1], [0], [0], [1], [0, 0, 1, 1], [], []>} : vector<128x4xbf16>, vector<4x128xbf16>, vector<128x128xf32> -> vector<128x128xf32>
    %38 = arith.addf %29, %37 : vector<128x128xf32>
    %c1_i32_26 = arith.constant 1 : i32
    %39 = arith.addi %1, %c1_i32_26 : i32
    %c0_27 = arith.constant 0 : index
    %40 = arith.index_cast %39 : i32 to index
    %c1_28 = arith.constant 1 : index
    %c0_29 = arith.constant 0 : index
    %41 = vector.load %arg3[%c0_27, %40, %c1_28, %c0_29] : memref<1x18x18x4xbf16, #tpu.memory_space<vmem>>, vector<1x8x16x4xbf16>
    %42 = vector.shape_cast %41 : vector<1x8x16x4xbf16> to vector<8x16x4xbf16>
    %43 = vector.shape_cast %42 : vector<8x16x4xbf16> to vector<128x4xbf16>
    %c4 = arith.constant 4 : index
    %c0_30 = arith.constant 0 : index
    %c0_31 = arith.constant 0 : index
    %44 = vector.load %arg4[%c4, %c0_30, %c0_31] : memref<9x4x128xbf16, #tpu.memory_space<vmem>>, vector<1x4x128xbf16>
    %45 = vector.shape_cast %44 : vector<1x4x128xbf16> to vector<4x128xbf16>
    %cst_32 = arith.constant dense<0.000000e+00> : vector<128x128xf32>
    %46 = tpu.matmul %43, %45, %cst_32 {dimension_numbers = #tpu.dot_dimension_numbers<[1], [0], [0], [1], [0, 0, 1, 1], [], []>} : vector<128x4xbf16>, vector<4x128xbf16>, vector<128x128xf32> -> vector<128x128xf32>
    %47 = arith.addf %38, %46 : vector<128x128xf32>
    %c1_i32_33 = arith.constant 1 : i32
    %48 = arith.addi %1, %c1_i32_33 : i32
    %c0_34 = arith.constant 0 : index
    %49 = arith.index_cast %48 : i32 to index
    %c2_35 = arith.constant 2 : index
    %c0_36 = arith.constant 0 : index
    %50 = vector.load %arg3[%c0_34, %49, %c2_35, %c0_36] : memref<1x18x18x4xbf16, #tpu.memory_space<vmem>>, vector<1x8x16x4xbf16>
    %51 = vector.shape_cast %50 : vector<1x8x16x4xbf16> to vector<8x16x4xbf16>
    %52 = vector.shape_cast %51 : vector<8x16x4xbf16> to vector<128x4xbf16>
    %c5 = arith.constant 5 : index
    %c0_37 = arith.constant 0 : index
    %c0_38 = arith.constant 0 : index
    %53 = vector.load %arg4[%c5, %c0_37, %c0_38] : memref<9x4x128xbf16, #tpu.memory_space<vmem>>, vector<1x4x128xbf16>
    %54 = vector.shape_cast %53 : vector<1x4x128xbf16> to vector<4x128xbf16>
    %cst_39 = arith.constant dense<0.000000e+00> : vector<128x128xf32>
    %55 = tpu.matmul %52, %54, %cst_39 {dimension_numbers = #tpu.dot_dimension_numbers<[1], [0], [0], [1], [0, 0, 1, 1], [], []>} : vector<128x4xbf16>, vector<4x128xbf16>, vector<128x128xf32> -> vector<128x128xf32>
    %56 = arith.addf %47, %55 : vector<128x128xf32>
    %c2_i32 = arith.constant 2 : i32
    %57 = arith.addi %1, %c2_i32 : i32
    %c0_40 = arith.constant 0 : index
    %58 = arith.index_cast %57 : i32 to index
    %c0_41 = arith.constant 0 : index
    %c0_42 = arith.constant 0 : index
    %59 = vector.load %arg3[%c0_40, %58, %c0_41, %c0_42] : memref<1x18x18x4xbf16, #tpu.memory_space<vmem>>, vector<1x8x16x4xbf16>
    %60 = vector.shape_cast %59 : vector<1x8x16x4xbf16> to vector<8x16x4xbf16>
    %61 = vector.shape_cast %60 : vector<8x16x4xbf16> to vector<128x4xbf16>
    %c6 = arith.constant 6 : index
    %c0_43 = arith.constant 0 : index
    %c0_44 = arith.constant 0 : index
    %62 = vector.load %arg4[%c6, %c0_43, %c0_44] : memref<9x4x128xbf16, #tpu.memory_space<vmem>>, vector<1x4x128xbf16>
    %63 = vector.shape_cast %62 : vector<1x4x128xbf16> to vector<4x128xbf16>
    %cst_45 = arith.constant dense<0.000000e+00> : vector<128x128xf32>
    %64 = tpu.matmul %61, %63, %cst_45 {dimension_numbers = #tpu.dot_dimension_numbers<[1], [0], [0], [1], [0, 0, 1, 1], [], []>} : vector<128x4xbf16>, vector<4x128xbf16>, vector<128x128xf32> -> vector<128x128xf32>
    %65 = arith.addf %56, %64 : vector<128x128xf32>
    %c2_i32_46 = arith.constant 2 : i32
    %66 = arith.addi %1, %c2_i32_46 : i32
    %c0_47 = arith.constant 0 : index
    %67 = arith.index_cast %66 : i32 to index
    %c1_48 = arith.constant 1 : index
    %c0_49 = arith.constant 0 : index
    %68 = vector.load %arg3[%c0_47, %67, %c1_48, %c0_49] : memref<1x18x18x4xbf16, #tpu.memory_space<vmem>>, vector<1x8x16x4xbf16>
    %69 = vector.shape_cast %68 : vector<1x8x16x4xbf16> to vector<8x16x4xbf16>
    %70 = vector.shape_cast %69 : vector<8x16x4xbf16> to vector<128x4xbf16>
    %c7 = arith.constant 7 : index
    %c0_50 = arith.constant 0 : index
    %c0_51 = arith.constant 0 : index
    %71 = vector.load %arg4[%c7, %c0_50, %c0_51] : memref<9x4x128xbf16, #tpu.memory_space<vmem>>, vector<1x4x128xbf16>
    %72 = vector.shape_cast %71 : vector<1x4x128xbf16> to vector<4x128xbf16>
    %cst_52 = arith.constant dense<0.000000e+00> : vector<128x128xf32>
    %73 = tpu.matmul %70, %72, %cst_52 {dimension_numbers = #tpu.dot_dimension_numbers<[1], [0], [0], [1], [0, 0, 1, 1], [], []>} : vector<128x4xbf16>, vector<4x128xbf16>, vector<128x128xf32> -> vector<128x128xf32>
    %74 = arith.addf %65, %73 : vector<128x128xf32>
    %c2_i32_53 = arith.constant 2 : i32
    %75 = arith.addi %1, %c2_i32_53 : i32
    %c0_54 = arith.constant 0 : index
    %76 = arith.index_cast %75 : i32 to index
    %c2_55 = arith.constant 2 : index
    %c0_56 = arith.constant 0 : index
    %77 = vector.load %arg3[%c0_54, %76, %c2_55, %c0_56] : memref<1x18x18x4xbf16, #tpu.memory_space<vmem>>, vector<1x8x16x4xbf16>
    %78 = vector.shape_cast %77 : vector<1x8x16x4xbf16> to vector<8x16x4xbf16>
    %79 = vector.shape_cast %78 : vector<8x16x4xbf16> to vector<128x4xbf16>
    %c8 = arith.constant 8 : index
    %c0_57 = arith.constant 0 : index
    %c0_58 = arith.constant 0 : index
    %80 = vector.load %arg4[%c8, %c0_57, %c0_58] : memref<9x4x128xbf16, #tpu.memory_space<vmem>>, vector<1x4x128xbf16>
    %81 = vector.shape_cast %80 : vector<1x4x128xbf16> to vector<4x128xbf16>
    %cst_59 = arith.constant dense<0.000000e+00> : vector<128x128xf32>
    %82 = tpu.matmul %79, %81, %cst_59 {dimension_numbers = #tpu.dot_dimension_numbers<[1], [0], [0], [1], [0, 0, 1, 1], [], []>} : vector<128x4xbf16>, vector<4x128xbf16>, vector<128x128xf32> -> vector<128x128xf32>
    %83 = arith.addf %74, %82 : vector<128x128xf32>
    %c0_60 = arith.constant 0 : index
    %c0_61 = arith.constant 0 : index
    %84 = vector.load %arg5[%c0_60, %c0_61] : memref<1x128xf32, #tpu.memory_space<vmem>>, vector<1x128xf32>
    %85 = vector.broadcast %84 : vector<1x128xf32> to vector<128x128xf32>
    %86 = arith.addf %83, %85 : vector<128x128xf32>
    %cst_62 = arith.constant 0.000000e+00 : f32
    %87 = vector.broadcast %cst_62 : f32 to vector<128x128xf32>
    %88 = arith.maximumf %86, %87 : vector<128x128xf32>
    %89 = vector.shape_cast %88 : vector<128x128xf32> to vector<1x8x16x128xf32>
    %90 = arith.truncf %89 : vector<1x8x16x128xf32> to vector<1x8x16x128xbf16>
    %c0_63 = arith.constant 0 : index
    %c0_64 = arith.constant 0 : index
    %c0_65 = arith.constant 0 : index
    %c0_66 = arith.constant 0 : index
    %91 = vector.load %arg6[%c0_63, %c0_64, %c0_65, %c0_66] : memref<1x8x16x128xbf16, #tpu.memory_space<vmem>>, vector<1x8x16x128xbf16>
    tpu.vector_store %arg6[%c0_63, %c0_64, %c0_65, %c0_66], %90 {strides = array<i32>} : memref<1x8x16x128xbf16, #tpu.memory_space<vmem>>, vector<1x8x16x128xbf16>,
    return
  }
  func.func @transform_0(%arg0: i32, %arg1: i32, %arg2: i32) -> (i32, i32, i32, i32) {
    %c0_i32 = arith.constant 0 : i32
    %c0_i32_0 = arith.constant 0 : i32
    %c0_i32_1 = arith.constant 0 : i32
    %c0_i32_2 = arith.constant 0 : i32
    return %arg0, %c0_i32, %c0_i32_0, %c0_i32_1 : i32, i32, i32, i32
  }
  func.func @transform_1(%arg0: i32, %arg1: i32, %arg2: i32) -> (i32, i32, i32) {
    %c0_i32 = arith.constant 0 : i32
    %c0_i32_0 = arith.constant 0 : i32
    %c0_i32_1 = arith.constant 0 : i32
    return %c0_i32, %c0_i32_0, %arg1 : i32, i32, i32
  }
  func.func @transform_2(%arg0: i32, %arg1: i32, %arg2: i32) -> (i32, i32) {
    %c0_i32 = arith.constant 0 : i32
    %c0_i32_0 = arith.constant 0 : i32
    return %c0_i32, %arg1 : i32, i32
  }
  func.func @transform_3(%arg0: i32, %arg1: i32, %arg2: i32) -> (i32, i32, i32, i32) {
    %c0_i32 = arith.constant 0 : i32
    %c0_i32_0 = arith.constant 0 : i32
    return %arg0, %arg2, %c0_i32, %arg1 : i32, i32, i32, i32
  }
}

</mosaic_0001>

<bundles_post_ra>
// kernel: basic_conv2d.1
= control target key start
LH: loop header
LB: loop body
LE: loop exit
PB: predicated region body
PF: predicated region fallthrough
CT: control target
= control target key end

     0   :  { %s3850_s12 = smov 0   ;;  %s3852_s13 = smov 0   ;;  %s4797_s0 = inlined_call_operand.vmem [shape: bf16[2,18,18,4], index: 0, kind: input, shape index: {}]   ;;  %s4798_s1 = inlined_call_operand.vmem [shape: bf16[9,4,128], index: 1, kind: input, shape index: {}]   ;;  %s4799_s2 = inlined_call_operand.vmem [shape: f32[1,128], index: 2, kind: input, shape index: {}]   ;;  %s4800_s3 = inlined_call_operand.vmem [shape: bf16[2,16,16,128], index: 3, kind: output, shape index: {}]  }
   0x1   :  { %s3854_s14 = smov 0   ;;  %s3856_s15 = smov 0  }
   0x2   :  { %s3858_s16 = smov 0  }
   0x3 LB: > { %s25_s17 = sadd.s32 1, %s3820_s14  ;;  %s32_s18 = sadd.s32 1, %s3824_s15  ;;  %s3828_s16 = sphi %s3858_s16, %s13_s16   ;;  %s3824_s15 = sphi %s3856_s15, %s4826_s15   ;;  %s3820_s14 = sphi %s3854_s14, %s4825_s14   ;;  %s3816_s13 = sphi %s3852_s13, %s4824_s13   ;;  %s3812_s12 = sphi %s3850_s12, %s4823_s12  }
   0x4   : > { %p26_p0 = scmp.ge.s32.totalorder %s25_s17, 2  ;;  %p2973_p1 = scmp.ge.s32.totalorder %s3828_s16, 1 }
   0x5   : > { %p177_p2 = scmp.lt.s32.totalorder %s3828_s16, 5 }
   0x6   : > { %s4828_s17 = smov (%p26_p0, %s25_s17), 0  ;;  %s4830_s18 = smov (!%p26_p0, %s32_s18), %s3824_s15 }
   0x7   : > { %p178_p3 = pnand %p2973_p1, %p177_p2  ;;  %p34_p4 = scmp.ge.s32.totalorder %s4830_s18, 2 }
   0x9   : > { %s4832_s18 = smov (%p34_p4, %s4830_s18), 0  ;;  %181 = sbr.rel (%p178_p3) target bundleno = 423 (0x1a7), region = 32 }
  0x10   : > { %v2982_v0 = vld [vmem:[%s4798_s1 + $0x2] sm:$0x3]  ;;  %vm518_vm0 = vcmask 1041408   ;;  %v3099_v1 = vld [vmem:[%s4798_s1 + $0x8] sm:$0x3]  ;;  %p216_p5 = scmp.lt.s32.totalorder %s3816_s13, 1 }
  0x11   : > { %3714 = vmatprep.subr.msk.bf16.mxu1 %vm518_vm0, %v2982_v0  ;;  %3718 = vmatprep.subr.msk.bf16.mxu0 %vm518_vm0, %v3099_v1  ;;  %v520_v2 = vsel %vm518_vm0, %v2982_v0, 0  ;;  %v3892_v3 = vsel %vm518_vm0, %v3099_v1, 0  ;;  %v263_v4 = vld [vmem:[%s4798_s1] sm:$0x3]  ;;  %s3277_s25 = smul.u32 96, %s3812_s12  ;;  %vm493_vm3 = vcmask 31744  }
  0x12   : > { %3423 = vmatpush3.bf16.msra.mxu1 %v520_v2  ;;  %3495 = vmatpush3.bf16.msra.mxu0 %v3892_v3  ;;  %s4834_s13 = smov (!%p216_p5, %s3816_s13), 1  ;;  %v3132_v5 = vld [vmem:[%s4798_s1 + $0xa] sm:$0x3]  ;;  %vm272_vm1 = vsmask.f32 3328  ;;  %v3934_v17 = vsel %vm518_vm0, %v263_v4, 0 }
  0x13   : > { %3715 = vmatprep.subr.msk.bf16.mxu1 %vm518_vm0, %v263_v4  ;;  %s3724_s28 = smul.u32 216, %s4834_s13  ;;  %3720 = vmatprep.subr.msk.bf16.mxu0 %vm518_vm0, %v3132_v5  ;;  %vm273_vm2 = vsmask.f32 7440  ;;  %v3940_v26 = vld [vmem:[%s4798_s1 + $0xc] sm:$0x3]  ;;  %v3957_v37 = vsel %vm518_vm0, %v3132_v5, 0 }
  0x14   : > { %vm3949_vm4 = vmor %vm272_vm1, %vm273_vm2  ;;  %v3961_v41 = vsel %vm518_vm0, %v3940_v26, 0  ;;  %vm807_vm5 = vcmask 1042432   ;;  %vm808_vm6 = vcmask 1046532   ;;  %s2977_s27 = sshll.u32 %s4834_s13, 5 }
  0x15   : > { %s220_s4 = scalar_lea.vmem %s4797_s0, %s3724_s28  ;;  %vm4104_vm7 = vmor %vm807_vm5, %vm808_vm6 }
  0x16   : > { %s3910_s5 = scalar_lea.vmem %s220_s4, %s3277_s25  ;;  %s2975_s25 = sshll.u32 %s3812_s12, 3 }
  0x17   : > { %v3913_v6 = vld [vmem:[%s3910_s5] sm:$0xf]  ;;  %v3916_v7 = vld [vmem:[%s3910_s5 + $0x4] sm:$0xf]  ;;  %v3919_v8 = vld [vmem:[%s3910_s5 + $0x8] sm:$0x1] }
  0x18   : > { %v276_v9 = vshrl.u32 %v3913_v6, 16  ;;  %v279_v10 = vshll.u32 %v3913_v6, 16  ;;  %v285_v11 = vshll.u32 %v3916_v7, 16  ;;  %v289_v12 = vshrl.u32 %v3916_v7, 16  ;;  %v3075_v13 = vld [vmem:[%s3910_s5 + $0xc] sm:$0xf] }
  0x19   : > { %v295_v14 = vshll.u32 %v3919_v8, 16  ;;  %v3928_v15 = vld [vmem:[%s3910_s5 + $0x10] sm:$0xf]  ;;  %v3931_v16 = vld [vmem:[%s3910_s5 + $0x14] sm:$0x1]  ;;  %v1259_v23 = vshrl.u32 %v3075_v13, 16 }
  0x1a   : > { %v278_v18 = vrot.slane %v276_v9, 4  ;;  %v281_v19 = vrot.slane %v279_v10, 5  ;;  %v287_v20 = vrot.slane %v285_v11, 5  ;;  %v291_v21 = vrot.slane %v289_v12, 4  ;;  %v3945_v31 = vld [vmem:[%s3910_s5 + $0xc] sm:$0xf] }
  0x1b   : > { %v297_v22 = vrot.slane %v295_v14, 5  ;;  %v1262_v24 = vshll.u32 %v3075_v13, 16  ;;  %v1268_v25 = vshll.u32 %v3928_v15, 16  ;;  %v1272_v29 = vshrl.u32 %v3928_v15, 16  ;;  %v3954_v36 = vld [vmem:[%s3910_s5 + $0x10] sm:$0xf] }
  0x1c   : > { %v282_v27 = vor.u32 %v281_v19, %v278_v18  ;;  %v292_v28 = vor.u32 %v291_v21, %v287_v20  ;;  %v1278_v30 = vshll.u32 %v3931_v16, 16  ;;  %v1261_v33 = vrot.slane %v1259_v23, 4  ;;  %v3964_v44 = vld [vmem:[%s3910_s5 + $0x14] sm:$0x1]  ;;  %v3078_v55 = vld [vmem:[%s3910_s5 + $0x18] sm:$0xf] }
  0x1d   : > { %v1264_v34 = vrot.slane %v1262_v24, 5  ;;  %v1270_v35 = vrot.slane %v1268_v25, 5  ;;  %v1274_v40 = vrot.slane %v1272_v29, 4  ;;  %v300_v45 = vshrl.u32 %v3945_v31, 16  ;;  %v3977_v60 = vld [vmem:[%s3910_s5 + $0x1c] sm:$0xf] }
  0x1e   : > { %v283_v38 = vrot.slane %v282_v27, 4  ;;  %v293_v39 = vrot.slane %v292_v28, 4  ;;  %v1280_v43 = vrot.slane %v1278_v30, 5  ;;  %v303_v46 = vshll.u32 %v3945_v31, 16  ;;  %v3985_v1 = vld [vmem:[%s3910_s5 + $0x20] sm:$0x1] }
  0x1f   : > { %v1265_v42 = vor.u32 %v1264_v34, %v1261_v33  ;;  %v1275_v49 = vor.u32 %v1274_v40, %v1270_v35  ;;  %v309_v50 = vshll.u32 %v3954_v36, 16  ;;  %v302_v53 = vrot.slane %v300_v45, 4  ;;  %v3993_v21 = vld [vmem:[%s3910_s5 + $0x18] sm:$0xf]  ;;  %v4000_v27 = vld [vmem:[%s3910_s5 + $0x1c] sm:$0xf] }
  0x20   : > { %v288_v47 = vsel %vm3949_vm4, %v283_v38, %v287_v20  ;;  %v298_v48 = vsel %vm3949_vm4, %v293_v39, %v297_v22  ;;  %v305_v54 = vrot.slane %v303_v46, 5  ;;  %v313_v58 = vshrl.u32 %v3954_v36, 16  ;;  %v4008_v38 = vld [vmem:[%s3910_s5 + $0x20] sm:$0x1]  ;;  %p231_p6 = scmp.lt.s32.totalorder %s2975_s25, 15 }
  0x21   : > { %v2983_v51 = vcombine.low %v288_v47, %v298_v48  ;;  %v1266_v52 = vrot.slane %v1265_v42, 4  ;;  %v1276_v56 = vrot.slane %v1275_v49, 4  ;;  %v311_v57 = vrot.slane %v309_v50, 5  ;;  %v3081_v47 = vld [vmem:[%s3910_s5 + $0x24] sm:$0xf] }
  0x22   : > { %v319_v59 = vshll.u32 %v3964_v44, 16  ;;  %v1650_v62 = vrot.slane %v3928_v15, 5  ;;  %v1653_v63 = vrot.slane %v3931_v16, 5  ;;  %v306_v0 = vor.u32 %v305_v54, %v302_v53  ;;  %s4836_s25 = smov (!%p231_p6, %s2975_s25), 15 }
  0x23   : > { %3424 = vmatprep.mubr.msk.bf16.mxu1 %vm493_vm3, %v2983_v51  ;;  %v1271_v61 = vsel %vm3949_vm4, %v1266_v52, %v1270_v35  ;;  %v1281_v2 = vsel %vm3949_vm4, %v1276_v56, %v1280_v43  ;;  %v315_v4 = vrot.slane %v313_v58, 4  ;;  %v1283_v9 = vshrl.u32 %v3078_v55, 16  ;;  %v4018_v52 = vld [vmem:[%s3910_s5 + $0x28] sm:$0xf]  ;;  %s2976_s26 = sshll.u32 %s4836_s25, 1 }
  0x24   : > { %v321_v5 = vrot.slane %v319_v59, 5  ;;  %v3100_v10 = vcombine.low %v1271_v61, %v1281_v2  ;;  %v307_v11 = vrot.slane %v306_v0, 4  ;;  %v1286_v12 = vshll.u32 %v3078_v55, 16  ;;  %v4030_v61 = vld [vmem:[%s3910_s5 + $0x2c] sm:$0x1]  ;;  %s238_s30 = sadd.s32 %s2977_s27, %s2976_s26 }
  0x25   : > { %v1292_v13 = vshll.u32 %v3977_v60, 16  ;;  %v316_v14 = vor.u32 %v315_v4, %v311_v57  ;;  %v1285_v18 = vrot.slane %v1283_v9, 4  ;;  %v1296_v19 = vshrl.u32 %v3977_v60, 16  ;;  %s2978_s12 = sshll.u32 %s238_s30, 2 }
  0x26   : > { %v1302_v20 = vshll.u32 %v3985_v1, 16  ;;  %3496 = vmatprep.mubr.msk.bf16.mxu0 %vm493_vm3, %v3100_v10  ;;  %v312_v22 = vsel %vm3949_vm4, %v307_v11, %v311_v57  ;;  %v1288_v23 = vrot.slane %v1286_v12, 5  ;;  %v1657_v25 = vrot.slane %v3977_v60, 5  ;;  %v4024_v57 = vld [vmem:[%s4798_s1 + $0x4] sm:$0x3] }
  0x27   : > { %v1294_v24 = vrot.slane %v1292_v13, 5  ;;  %v317_v28 = vrot.slane %v316_v14, 4  ;;  %v1298_v29 = vrot.slane %v1296_v19, 4  ;;  %v1660_v33 = vrot.slane %v3985_v1, 5  ;;  %v4037_v11 = vld [vmem:[%s3910_s5 + $0x24] sm:$0xf] }
  0x28   : > { %v1304_v30 = vrot.slane %v1302_v20, 5  ;;  %v1289_v34 = vor.u32 %v1288_v23, %v1285_v18  ;;  %v4005_v35 = vrot.slane %v1657_v25, 4  ;;  %v324_v39 = vshrl.u32 %v3993_v21, 16  ;;  %v4040_v19 = vld [vmem:[%s3910_s5 + $0x28] sm:$0xf] }
  0x29   : > { %v327_v40 = vshll.u32 %v3993_v21, 16  ;;  %v322_v42 = vsel %vm3949_vm4, %v317_v28, %v321_v5  ;;  %v1299_v43 = vor.u32 %v1298_v29, %v1294_v24  ;;  %v333_v45 = vshll.u32 %v4000_v27, 16  ;;  %v4050_v29 = vld [vmem:[%s3910_s5 + $0x2c] sm:$0x1] }
  0x2a   : > { %v337_v46 = vshrl.u32 %v4000_v27, 16  ;;  %v2984_v48 = vcombine.low %v312_v22, %v322_v42  ;;  %v1290_v49 = vrot.slane %v1289_v34, 4  ;;  %v326_v50 = vrot.slane %v324_v39, 4 }
  0x2b   : > { %v329_v51 = vrot.slane %v327_v40, 5  ;;  %v1300_v53 = vrot.slane %v1299_v43, 4  ;;  %v335_v54 = vrot.slane %v333_v45, 5  ;;  %v343_v56 = vshll.u32 %v4008_v38, 16  ;;  %v3084_v45 = vld [vmem:[%s3910_s5 + $0x30] sm:$0xf] }
  0x2c   : > { %v339_v55 = vrot.slane %v337_v46, 4  ;;  %3425 = vmatmul.mubr.msk.bf16.vlgmr.msra.gmra.mrb[0].mxu1 %vm493_vm3, %v2984_v48  ;;  %v1295_v58 = vsel %vm3949_vm4, %v1290_v49, %v1294_v24  ;;  %v1307_v0 = vshrl.u32 %v3081_v47, 16  ;;  %v1310_v2 = vshll.u32 %v3081_v47, 16 }
  0x2d   : > { %v330_v59 = vor.u32 %v329_v51, %v326_v50  ;;  %3441 = vmatpush3.bf16.msra.mxu1 %v3934_v17  ;;  %v1305_v4 = vsel %vm3949_vm4, %v1300_v53, %v1304_v30  ;;  %v345_v9 = vrot.slane %v343_v56, 5  ;;  %v1316_v10 = vshll.u32 %v4018_v52, 16  ;;  %v4060_v50 = vld [vmem:[%s3910_s5 + $0x34] sm:$0xf] }
  0x2e   : > { %v340_v5 = vor.u32 %v339_v55, %v335_v54  ;;  %v3101_v12 = vcombine.low %v1295_v58, %v1305_v4  ;;  %v1309_v14 = vrot.slane %v1307_v0, 4  ;;  %v1312_v18 = vrot.slane %v1310_v2, 5  ;;  %3716 = vmatprep.subr.msk.bf16.mxu1 %vm518_vm0, %v4024_v57  ;;  %v4070_v58 = vld [vmem:[%s3910_s5 + $0x38] sm:$0x1] }
  0x2f   : > { %v331_v13 = vrot.slane %v330_v59, 4  ;;  %v1318_v20 = vrot.slane %v1316_v10, 5  ;;  %v1320_v22 = vshrl.u32 %v4018_v52, 16  ;;  %v1326_v23 = vshll.u32 %v4030_v61, 16 }
  0x30   : > { %v341_v17 = vrot.slane %v340_v5, 4  ;;  %3497 = vmatmul.mubr.msk.bf16.vlgmr.msra.gmra.mrb[0].mxu0 %vm493_vm3, %v3101_v12  ;;  %v1313_v28 = vor.u32 %v1312_v18, %v1309_v14  ;;  %v348_v30 = vshrl.u32 %v4037_v11, 16  ;;  %v351_v34 = vshll.u32 %v4037_v11, 16  ;;  %v4075_v14 = vld [vmem:[%s3910_s5 + $0x30] sm:$0xf] }
  0x31   : > { %v336_v24 = vsel %vm3949_vm4, %v331_v13, %v335_v54  ;;  %3513 = vmatpush3.bf16.msra.mxu0 %v3957_v37  ;;  %v1322_v40 = vrot.slane %v1320_v22, 4  ;;  %v1328_v42 = vrot.slane %v1326_v23, 5  ;;  %v357_v43 = vshll.u32 %v4040_v19, 16  ;;  %v4081_v23 = vld [vmem:[%s3910_s5 + $0x34] sm:$0xf] }
  0x32   : > { %v346_v39 = vsel %vm3949_vm4, %v341_v17, %v345_v9  ;;  %v1314_v47 = vrot.slane %v1313_v28, 4  ;;  %v350_v48 = vrot.slane %v348_v30, 4  ;;  %v353_v49 = vrot.slane %v351_v34, 5  ;;  %3721 = vmatprep.subr.msk.bf16.mxu0 %vm518_vm0, %v3940_v26 }
  0x33   : > { %v2985_v46 = vcombine.low %v336_v24, %v346_v39  ;;  %v1323_v37 = vor.u32 %v1322_v40, %v1318_v20  ;;  %v359_v51 = vrot.slane %v357_v43, 5  ;;  %v361_v53 = vshrl.u32 %v4040_v19, 16  ;;  %v4086_v39 = vld [vmem:[%s3910_s5 + $0x38] sm:$0x1] }
  0x34   : > { %v367_v54 = vshll.u32 %v4050_v29, 16  ;;  %v1319_v55 = vsel %vm3949_vm4, %v1314_v47, %v1318_v20  ;;  %v354_v56 = vor.u32 %v353_v49, %v350_v48  ;;  %v1331_v59 = vshrl.u32 %v3084_v45, 16 }
  0x35   : > { %3428 = vmatprep.mubr.msk.bf16.mxu1 %vm493_vm3, %v2985_v46  ;;  %v1334_v0 = vshll.u32 %v3084_v45, 16  ;;  %v1324_v2 = vrot.slane %v1323_v37, 4  ;;  %v363_v26 = vrot.slane %v361_v53, 4  ;;  %v1340_v5 = vshll.u32 %v4060_v50, 16  ;;  %v3116_v37 = vld [vmem:[%s3910_s5 + $0xc] sm:$0xe] }
  0x36   : > { %v369_v4 = vrot.slane %v367_v54, 5  ;;  %v355_v9 = vrot.slane %v354_v56, 4  ;;  %v1333_v10 = vrot.slane %v1331_v59, 4  ;;  %v1344_v13 = vshrl.u32 %v4060_v50, 16  ;;  %v4098_v56 = vld [vmem:[%s3910_s5 + $0x3c] sm:$0xf] }
  0x37   : > { %v1336_v12 = vrot.slane %v1334_v0, 5  ;;  %v1329_v18 = vsel %vm3949_vm4, %v1324_v2, %v1328_v42  ;;  %v364_v17 = vor.u32 %v363_v26, %v359_v51  ;;  %v1342_v20 = vrot.slane %v1340_v5, 5 }
  0x38   : > { %v1350_v22 = vshll.u32 %v4070_v58, 16  ;;  %v3102_v24 = vcombine.low %v1319_v55, %v1329_v18  ;;  %v360_v28 = vsel %vm3949_vm4, %v355_v9, %v359_v51  ;;  %v1346_v34 = vrot.slane %v1344_v13, 4  ;;  %v4112_v18 = vld [vmem:[%s3910_s5 + $0x44] sm:$0x1] }
  0x39   : > { %v1337_v30 = vor.u32 %v1336_v12, %v1333_v10  ;;  %v365_v40 = vrot.slane %v364_v17, 4  ;;  %v372_v42 = vshrl.u32 %v4075_v14, 16  ;;  %v375_v45 = vshll.u32 %v4075_v14, 16  ;;  %v3117_v17 = vld [vmem:[%s3910_s5 + $0x18] sm:$0xe] }
  0x3a   : > { %v1352_v43 = vrot.slane %v1350_v22, 5  ;;  %3500 = vmatprep.mubr.msk.bf16.mxu0 %vm493_vm3, %v3102_v24  ;;  %v1347_v47 = vor.u32 %v1346_v34, %v1342_v20  ;;  %v381_v48 = vshll.u32 %v4081_v23, 16  ;;  %v385_v49 = vshrl.u32 %v4081_v23, 16 }
  0x3b   : > { %v1338_v46 = vrot.slane %v1337_v30, 4  ;;  %v370_v51 = vsel %vm3949_vm4, %v365_v40, %v369_v4  ;;  %v374_v53 = vrot.slane %v372_v42, 4  ;;  %v377_v54 = vrot.slane %v375_v45, 5  ;;  %v4109_v4 = vld [vmem:[%s3910_s5 + $0x40] sm:$0xf] }
  0x3c   : > { %v391_v55 = vshll.u32 %v4086_v39, 16  ;;  %v2986_v59 = vcombine.low %v360_v28, %v370_v51  ;;  %v1348_v2 = vrot.slane %v1347_v47, 4  ;;  %v383_v26 = vrot.slane %v381_v48, 5  ;;  %v4123_v30 = vld [vmem:[%s3910_s5 + $0x48] sm:$0xf] }
  0x3d   : > { %v1343_v0 = vsel %vm3949_vm4, %v1338_v46, %v1342_v20  ;;  %v378_v9 = vor.u32 %v377_v54, %v374_v53  ;;  %v387_v10 = vrot.slane %v385_v49, 4  ;;  %v3124_v13 = vrot.slane %v3116_v37, 9 }
  0x3e   : > { %v393_v12 = vrot.slane %v391_v55, 5  ;;  %3429 = vmatmul.mubr.msk.bf16.gmra.mrb[4].mxu1 %vm493_vm3, %v2986_v59  ;;  %v1353_v20 = vsel %vm3949_vm4, %v1348_v2, %v1352_v43  ;;  %v1652_v22 = vrot.slane %v1650_v62, 4  ;;  %v396_v24 = vshrl.u32 %v4098_v56, 16  ;;  %v4143_v55 = vld [vmem:[%s3910_s5 + $0x50] sm:$0x1] }
  0x3f   : > { %v399_v28 = vshll.u32 %v4098_v56, 16  ;;  %v3103_v34 = vcombine.low %v1343_v0, %v1353_v20  ;;  %v379_v40 = vrot.slane %v378_v9, 4  ;;  %v388_v42 = vor.u32 %v387_v10, %v383_v26 }
  0x40   : > { %v1651_v45 = vsel %vm4104_vm7, %v3124_v13, %v1650_v62  ;;  %v1654_v43 = vsel %vm4104_vm7, %v1652_v22, %v1653_v63  ;;  %v398_v46 = vrot.slane %v396_v24, 4  ;;  %v405_v48 = vshll.u32 %v4109_v4, 16  ;;  %v4139_v62 = vld [vmem:[%s3910_s5 + $0x4c] sm:$0xf] }
  0x41   : > { %v401_v47 = vrot.slane %v399_v28, 5  ;;  %3501 = vmatmul.mubr.msk.bf16.gmra.mrb[4].mxu0 %vm493_vm3, %v3103_v34  ;;  %v384_v49 = vsel %vm3949_vm4, %v379_v40, %v383_v26  ;;  %v389_v37 = vrot.slane %v388_v42, 4  ;;  %v3133_v15 = vcombine.low %v1651_v45, %v1654_v43  ;;  %v4161_v28 = vld [vmem:[%s3910_s5 + $0x54] sm:$0xf]  ;;  %v4172_v34 = vld [vmem:[%s4798_s1 + $0xe] sm:$0x3] }
  0x42   : > { %v409_v51 = vshrl.u32 %v4109_v4, 16  ;;  %v407_v53 = vrot.slane %v405_v48, 5  ;;  %v415_v63 = vshll.u32 %v4112_v18, 16  ;;  %v3125_v54 = vrot.slane %v3117_v17, 9 }
  0x43   : > { %v402_v16 = vor.u32 %v401_v47, %v398_v46  ;;  %v394_v59 = vsel %vm3949_vm4, %v389_v37, %v393_v12  ;;  %3514 = vmatprep.mubr.msk.bf16.mxu0 %vm493_vm3, %v3133_v15  ;;  %v1661_v2 = vsel %vm4104_vm7, %v4005_v35, %v1660_v33  ;;  %v420_v26 = vshrl.u32 %v4123_v30, 16  ;;  %v3118_v12 = vld [vmem:[%s3910_s5 + $0x24] sm:$0xe]  ;;  %v4177_v37 = vld [vmem:[%s3910_s5 + $0x58] sm:$0xf] }
  0x44   : > { %v411_v0 = vrot.slane %v409_v51, 4  ;;  %v2987_v9 = vcombine.low %v384_v49, %v394_v59  ;;  %v417_v13 = vrot.slane %v415_v63, 5  ;;  %v1658_v17 = vsel %vm4104_vm7, %v3125_v54, %v1657_v25  ;;  %v4186_v54 = vld [vmem:[%s3910_s5 + $0x5c] sm:$0x1] }
  0x45   : > { %v403_v10 = vrot.slane %v402_v16, 4  ;;  %v3134_v22 = vcombine.low %v1658_v17, %v1661_v2  ;;  %v422_v24 = vrot.slane %v420_v26, 4  ;;  %v423_v1 = vshll.u32 %v4123_v30, 16 }
  0x46   : > { %v412_v20 = vor.u32 %v411_v0, %v407_v53  ;;  %3432 = vmatprep.mubr.msk.bf16.mxu1 %vm493_vm3, %v2987_v9  ;;  %v429_v35 = vshll.u32 %v4139_v62, 16  ;;  %v433_v60 = vshrl.u32 %v4139_v62, 16  ;;  %v439_v25 = vshll.u32 %v4143_v55, 16 }
  0x47   : > { %v408_v33 = vsel %vm3949_vm4, %v403_v10, %v407_v53  ;;  %v425_v42 = vrot.slane %v423_v1, 5  ;;  %v3126_v45 = vrot.slane %v3118_v12, 9  ;;  %v1664_v43 = vrot.slane %v4018_v52, 5  ;;  %v3119_v10 = vld [vmem:[%s3910_s5 + $0x30] sm:$0xe] }
  0x48   : > { %v413_v40 = vrot.slane %v412_v20, 4  ;;  %v431_v46 = vrot.slane %v429_v35, 5  ;;  %v435_v47 = vrot.slane %v433_v60, 4  ;;  %v441_v48 = vrot.slane %v439_v25, 5 }
  0x49   : > { %v1667_v49 = vrot.slane %v4030_v61, 5  ;;  %3515 = vmatmul.mubr.msk.bf16.vlgmr.msra.gmra.mrb[0].mxu0 %vm493_vm3, %v3134_v22  ;;  %v426_v51 = vor.u32 %v425_v42, %v422_v24  ;;  %v1665_v16 = vsel %vm4104_vm7, %v3126_v45, %v1664_v43  ;;  %v1666_v53 = vrot.slane %v1664_v43, 4  ;;  %v4207_v42 = vld [vmem:[%s3910_s5 + $0x40] sm:$0xf]  ;;  %v4210_v45 = vld [vmem:[%s3910_s5 + $0x44] sm:$0x1] }
  0x4a   : > { %v418_v15 = vsel %vm3949_vm4, %v413_v40, %v417_v13  ;;  %3531 = vmatpush3.bf16.msra.mxu0 %v3961_v41  ;;  %v436_v52 = vor.u32 %v435_v47, %v431_v46  ;;  %v444_v61 = vshrl.u32 %v4161_v28, 16  ;;  %v447_v59 = vshll.u32 %v4161_v28, 16 }
  0x4b   : > { %v2988_v63 = vcombine.low %v408_v33, %v418_v15  ;;  %v427_v0 = vrot.slane %v426_v51, 4  ;;  %v1668_v2 = vsel %vm4104_vm7, %v1666_v53, %v1667_v49  ;;  %v453_v26 = vshll.u32 %v4177_v37, 16  ;;  %3722 = vmatprep.subr.msk.bf16.mxu0 %vm518_vm0, %v4172_v34  ;;  %v3120_v33 = vld [vmem:[%s3910_s5 + $0x3c] sm:$0xe] }
  0x4c   : > { %v457_v9 = vshrl.u32 %v4177_v37, 16  ;;  %v437_v41 = vrot.slane %v436_v52, 4  ;;  %v3135_v13 = vcombine.low %v1665_v16, %v1668_v2  ;;  %v446_v17 = vrot.slane %v444_v61, 4  ;;  %v3121_v2 = vld [vmem:[%s3910_s5 + $0x48] sm:$0xe] }
  0x4d   : > { %3433 = vmatmul.mubr.msk.bf16.gmra.mrb[8].mxu1 %vm493_vm3, %v2988_v63  ;;  %v449_v12 = vrot.slane %v447_v59, 5  ;;  %v432_v20 = vsel %vm3949_vm4, %v427_v0, %v431_v46  ;;  %v455_v22 = vrot.slane %v453_v26, 5  ;;  %v463_v1 = vshll.u32 %v4186_v54, 16  ;;  %v4225_v59 = vld [vmem:[%s3910_s5 + $0x4c] sm:$0xf] }
  0x4e   : > { %v459_v24 = vrot.slane %v457_v9, 4  ;;  %v442_v35 = vsel %vm3949_vm4, %v437_v41, %v441_v48  ;;  %3518 = vmatprep.mubr.msk.bf16.mxu0 %vm493_vm3, %v3135_v13  ;;  %v3127_v25 = vrot.slane %v3119_v10, 9  ;;  %v1671_v40 = vrot.slane %v4060_v50, 5  ;;  %v4228_v0 = vld [vmem:[%s3910_s5 + $0x50] sm:$0x1] }
  0x4f   : > { %v450_v60 = vor.u32 %v449_v12, %v446_v17  ;;  %v2989_v43 = vcombine.low %v432_v20, %v442_v35  ;;  %v465_v47 = vrot.slane %v463_v1, 5  ;;  %v1674_v49 = vrot.slane %v4070_v58, 5  ;;  %v4236_v17 = vld [vmem:[%s3910_s5 + $0x58] sm:$0xf]  ;;  %v4239_v12 = vld [vmem:[%s3910_s5 + $0x5c] sm:$0x1] }
  0x50   : > { %v460_v46 = vor.u32 %v459_v24, %v455_v22  ;;  %v1672_v48 = vsel %vm4104_vm7, %v3127_v25, %v1671_v40  ;;  %v1673_v51 = vrot.slane %v1671_v40, 4  ;;  %v3128_v16 = vrot.slane %v3120_v33, 9  ;;  %4810 = vst [vmem:[#allocation2_spill] sm:$0xff] %v4239_v12  ;;  %v4249_v35 = vld [vmem:[%s3910_s5 + $0x64] sm:$0xf] }
  0x51   : > { %v451_v15 = vrot.slane %v450_v60, 4  ;;  %3436 = vmatprep.mubr.msk.bf16.mxu1 %vm493_vm3, %v2989_v43  ;;  %v1678_v53 = vrot.slane %v4207_v42, 5  ;;  %v1681_v63 = vrot.slane %v4210_v45, 5  ;;  %v2999_v61 = vcombine.low %v3913_v6, %v3916_v7  ;;  %v3122_v6 = vld [vmem:[%s3910_s5 + $0x54] sm:$0xe]  ;;  %4811 = vst [vmem:[#allocation3_spill] sm:$0xff] %v4249_v35 }
  0x52   : > { %v461_v50 = vrot.slane %v460_v46, 4  ;;  %v1675_v58 = vsel %vm4104_vm7, %v1673_v51, %v1674_v49  ;;  %v1685_v24 = vrot.slane %v4225_v59, 5  ;;  %v1688_v1 = vrot.slane %v4228_v0, 5  ;;  %v4252_v60 = vld [vmem:[%s3910_s5 + $0x68] sm:$0x1] }
  0x53   : > { %v456_v52 = vsel %vm3949_vm4, %v451_v15, %v455_v22  ;;  %v3136_v9 = vcombine.low %v1672_v48, %v1675_v58  ;;  %v1679_v10 = vsel %vm4104_vm7, %v3128_v16, %v1678_v53  ;;  %v1680_v41 = vrot.slane %v1678_v53, 4  ;;  %4812 = vst [vmem:[#allocation4_spill] sm:$0xff] %v4252_v60 }
  0x54   : > { %v466_v26 = vsel %vm3949_vm4, %v461_v50, %v465_v47  ;;  %v3129_v22 = vrot.slane %v3121_v2, 9  ;;  %v1687_v40 = vrot.slane %v1685_v24, 4  ;;  %v3130_v43 = vrot.slane %v3122_v6, 9  ;;  %v3123_v47 = vld [vmem:[%s3910_s5 + $0x60] sm:$0xe] }
  0x55   : > { %v2990_v13 = vcombine.low %v456_v52, %v466_v26  ;;  %3519 = vmatmul.mubr.msk.bf16.gmra.mrb[4].mxu0 %vm493_vm3, %v3136_v9  ;;  %v1682_v20 = vsel %vm4104_vm7, %v1680_v41, %v1681_v63  ;;  %v1692_v46 = vrot.slane %v4236_v17, 5  ;;  %v819_v49 = vrot.slane %v3954_v36, 5  ;;  %v785_v2 = vld [vmem:[%s3910_s5 + $0x18] sm:$0xe]  ;;  %v4284_v6 = vld [vmem:[%s4798_s1 + $0x6] sm:$0x3] }
  0x56   : > { %v3137_v33 = vcombine.low %v1679_v10, %v1682_v20  ;;  %v1686_v25 = vsel %vm4104_vm7, %v3129_v22, %v1685_v24  ;;  %v1695_v15 = vrot.slane %v4239_v12, 5  ;;  %v1689_v48 = vsel %vm4104_vm7, %v1687_v40, %v1688_v1  ;;  %v787_v1 = vld [vmem:[%s3910_s5 + $0x30] sm:$0xe] }
  0x57   : > { %3437 = vmatmul.mubr.msk.bf16.gmra.mrb[12].mxu1 %vm493_vm3, %v2990_v13  ;;  %v1693_v51 = vsel %vm4104_vm7, %v3130_v43, %v1692_v46  ;;  %v1694_v16 = vrot.slane %v1692_v46, 4  ;;  %v1699_v50 = vrot.slane %v4249_v35, 5  ;;  %v3000_v53 = vcombine.low %v3945_v31, %v3954_v36  ;;  %v786_v36 = vld [vmem:[%s3910_s5 + $0x24] sm:$0xe]  ;;  %v4558_v12 = vld [vmem:[%s3910_s5 + $0x70] sm:$0xf] }
  0x58   : > { %3442 = vmatprep.mubr.msk.bf16.mxu1 %vm493_vm3, %v2999_v61  ;;  %3522 = vmatprep.mubr.msk.bf16.mxu0 %vm493_vm3, %v3137_v33  ;;  %v3138_v63 = vcombine.low %v1686_v25, %v1689_v48  ;;  %v3131_v52 = vrot.slane %v3123_v47, 9  ;;  %v1702_v58 = vrot.slane %v4252_v60, 5  ;;  %v784_v61 = vld [vmem:[%s3910_s5 + $0xc] sm:$0xe]  ;;  %v822_v26 = vrot.slane %v3964_v44, 5 }
  0x59   : > { %v3001_v9 = vcombine.low %v3993_v21, %v4000_v27  ;;  %v1696_v10 = vsel %vm4104_vm7, %v1694_v16, %v1695_v15  ;;  %v1701_v41 = vrot.slane %v1699_v50, 4  ;;  %v917_v13 = vsel %vm518_vm0, %v4024_v57, 0  ;;  %v3770_v16 = vld [vmem:[%s3910_s5 + $0x18] sm:$0xff]   ;;  %v4530_v60 = vld [vmem:[%s3910_s5 + $0x64] sm:$0xf] }
  0x5a   : > { %v3139_v31 = vcombine.low %v1693_v51, %v1696_v10  ;;  %v3016_v44 = vrot.slane %v784_v61, 9  ;;  %v821_v20 = vrot.slane %v819_v49, 4  ;;  %v3017_v21 = vrot.slane %v785_v2, 9  ;;  %4813 = vst [vmem:[#allocation5_spill] sm:$0xff] %v4530_v60 }
  0x5b   : > { %v1700_v22 = vsel %vm4104_vm7, %v3131_v52, %v1699_v50  ;;  %v1703_v57 = vsel %vm4104_vm7, %v1701_v41, %v1702_v58  ;;  %v826_v24 = vrot.slane %v4000_v27, 5  ;;  %v829_v40 = vrot.slane %v4008_v38, 5 }
  0x5c   : > { %v4297_v33 = vsel %vm4104_vm7, %v3016_v44, %v819_v49  ;;  %v4301_v25 = vsel %vm4104_vm7, %v821_v20, %v822_v26  ;;  %v3018_v43 = vrot.slane %v786_v36, 9  ;;  %v3140_v49 = vcombine.low %v1700_v22, %v1703_v57  ;;  %v3184_v26 = vld [vmem:[%s3910_s5 + $0x18] sm:$0xf]  ;;  %v3772_v57 = vld [vmem:[%s3910_s5 + $0x24] sm:$0xff]  }
  0x5d   : > { %3523 = vmatmul.mubr.msk.bf16.gmra.mrb[8].mxu0 %vm493_vm3, %v3138_v63  ;;  %v3025_v27 = vcombine.low %v4297_v33, %v4301_v25  ;;  %v4310_v46 = vsel %vm4104_vm7, %v3017_v21, %v826_v24  ;;  %v828_v47 = vrot.slane %v826_v24, 4  ;;  %v833_v15 = vrot.slane %v4040_v19, 5 }
  0x5e   : > { %3526 = vmatprep.mubr.msk.bf16.mxu0 %vm493_vm3, %v3139_v31  ;;  %v836_v48 = vrot.slane %v4050_v29, 5  ;;  %v3019_v38 = vrot.slane %v787_v1, 9  ;;  %v3002_v51 = vcombine.low %v4037_v11, %v4040_v19  ;;  %v843_v63 = vrot.slane %v4086_v39, 5  ;;  %v788_v19 = vld [vmem:[%s3910_s5 + $0x3c] sm:$0xe] }
  0x5f   : > { %3443 = vmatmul.mubr.msk.bf16.vlgmr.msra.gmra.mrb[0].mxu1 %vm493_vm3, %v3000_v53  ;;  %v4319_v50 = vsel %vm4104_vm7, %v828_v47, %v829_v40  ;;  %v840_v53 = vrot.slane %v4081_v23, 5  ;;  %v3003_v52 = vcombine.low %v4075_v14, %v4081_v23  ;;  %v4329_v58 = vsel %vm4104_vm7, %v3018_v43, %v833_v15  ;;  %v783_v14 = vld [vmem:[%s3910_s5] sm:$0xe]  ;;  %v4357_v31 = vld [vmem:[%s3910_s5 + $0x1c] sm:$0xf] }
  0x60   : > { %3459 = vmatpush3.bf16.msra.mxu1 %v917_v13  ;;  %3446 = vmatprep.mubr.msk.bf16.mxu1 %vm493_vm3, %v3001_v9  ;;  %v3026_v29 = vcombine.low %v4310_v46, %v4319_v50  ;;  %v835_v11 = vrot.slane %v833_v15, 4  ;;  %v812_v61 = vrot.slane %v3916_v7, 5  ;;  %v3020_v10 = vrot.slane %v788_v19, 9  ;;  %v789_v1 = vld [vmem:[%s3910_s5 + $0x48] sm:$0xe] }
  0x61   : > { %3717 = vmatprep.subr.msk.bf16.mxu1 %vm518_vm0, %v4284_v6  ;;  %v4335_v2 = vsel %vm4104_vm7, %v3019_v38, %v840_v53  ;;  %v842_v39 = vrot.slane %v840_v53, 4  ;;  %v815_v41 = vrot.slane %v3919_v8, 5  ;;  %v3015_v36 = vrot.slane %v783_v14, 9  ;;  %v4383_v38 = vld [vmem:[%s4798_s1 + $0x10] sm:$0x3] }
  0x62   : > { %v4341_v23 = vsel %vm4104_vm7, %v835_v11, %v836_v48  ;;  %v814_v44 = vrot.slane %v812_v61, 4  ;;  %v847_v20 = vrot.slane %v4109_v4, 5  ;;  %v850_v21 = vrot.slane %v4112_v18, 5  ;;  %v4404_v14 = vld [vmem:[%s3910_s5 + $0x28] sm:$0xf] }
  0x63   : > { %v4350_v9 = vsel %vm4104_vm7, %v842_v39, %v843_v63  ;;  %v3004_v22 = vcombine.low %v4098_v56, %v4109_v4  ;;  %v2097_v24 = vshrl.u32 %v3184_v26, 16  ;;  %v2100_v8 = vshll.u32 %v3184_v26, 16  ;;  %v3774_v4 = vld [vmem:[%s3910_s5 + $0x30] sm:$0xff]   ;;  %v4506_v46 = vld [vmem:[%s3910_s5 + $0x44] sm:$0x1] }
  0x64   : > { %v2106_v40 = vshll.u32 %v4357_v31, 16  ;;  %v2110_v43 = vshrl.u32 %v4357_v31, 16  ;;  %v4369_v47 = vsel %vm4104_vm7, %v3020_v10, %v847_v20  ;;  %v2339_v18 = vsel %vm518_vm0, %v4172_v34, 0  ;;  %v3202_v7 = vld [vmem:[%s3910_s5 + $0x60] sm:$0xf] }
  0x65   : > { %3527 = vmatmul.mubr.msk.bf16.gmra.mrb[12].mxu0 %vm493_vm3, %v3140_v49  ;;  %v849_v49 = vrot.slane %v847_v20, 4  ;;  %v3005_v56 = vcombine.low %v4123_v30, %v4139_v62  ;;  %v813_v15 = vsel %vm4104_vm7, %v3015_v36, %v812_v61  ;;  %v816_v48 = vsel %vm4104_vm7, %v814_v44, %v815_v41  ;;  %v4391_v30 = vld [vmem:[%s3910_s5 + $0x20] sm:$0x1]  ;;  %v3187_v61 = vld [vmem:[%s3910_s5 + $0x24] sm:$0xf] }
  0x66   : > { %3532 = vmatprep.mubr.msk.bf16.mxu0 %vm493_vm3, %v3770_v16  ;;  %v3021_v34 = vrot.slane %v789_v1, 9  ;;  %v2099_v16 = vrot.slane %v2097_v24, 4  ;;  %v2102_v53 = vrot.slane %v2100_v8, 5  ;;  %v4397_v11 = vrot.slane %v2106_v40, 5  ;;  %v790_v44 = vld [vmem:[%s3910_s5 + $0x54] sm:$0xe] }
  0x67   : > { %3447 = vmatmul.mubr.msk.bf16.gmra.mrb[4].mxu1 %vm493_vm3, %v3002_v51  ;;  %v4387_v51 = vsel %vm4104_vm7, %v849_v49, %v850_v21  ;;  %v2112_v19 = vrot.slane %v2110_v43, 4  ;;  %v857_v39 = vrot.slane %v4143_v55, 5  ;;  %v3006_v10 = vcombine.low %v4161_v28, %v4177_v37  ;;  %v3190_v55 = vld [vmem:[%s3910_s5 + $0x30] sm:$0xf]  ;;  %v3776_v20 = vld [vmem:[%s3910_s5 + $0x3c] sm:$0xff]   ;;  %v3777_v1 = vld [vmem:[%s3910_s5 + $0x48] sm:$0xff]  }
  0x68   : > { %3450 = vmatprep.mubr.msk.bf16.mxu1 %vm493_vm3, %v3003_v52  ;;  %v854_v52 = vrot.slane %v4139_v62, 5  ;;  %v3024_v41 = vcombine.low %v813_v15, %v816_v48  ;;  %v2116_v36 = vshll.u32 %v4391_v30, 16  ;;  %v2103_v21 = vor.u32 %v2102_v53, %v2099_v16  ;;  %v4423_v8 = vld [vmem:[%s3910_s5 + $0x34] sm:$0xf] }
  0x69   : > { %v2113_v28 = vor.u32 %v2112_v19, %v4397_v11  ;;  %v2130_v40 = vshll.u32 %v4404_v14, 16  ;;  %v2134_v43 = vshrl.u32 %v4404_v14, 16  ;;  %v861_v15 = vrot.slane %v4177_v37, 5 }
  0x6a   : > { %v4408_v62 = vsel %vm4104_vm7, %v3021_v34, %v854_v52  ;;  %v856_v26 = vrot.slane %v854_v52, 4  ;;  %v2154_v48 = vshll.u32 %v4423_v8, 16  ;;  %v2158_v34 = vshrl.u32 %v4423_v8, 16 }
  0x6b   : > { %v864_v16 = vrot.slane %v4186_v54, 5  ;;  %v2104_v53 = vrot.slane %v2103_v21, 4  ;;  %v2118_v52 = vrot.slane %v2116_v36, 5  ;;  %v2114_v37 = vrot.slane %v2113_v28, 4  ;;  %v4446_v36 = vld [vmem:[%s3910_s5 + $0x2c] sm:$0x1] }
  0x6c   : > { %v4420_v24 = vsel %vm4104_vm7, %v856_v26, %v857_v39  ;;  %v4442_v26 = vrot.slane %v2130_v40, 5  ;;  %v4453_v21 = vld [vmem:[%s3910_s5 + $0x38] sm:$0x1]  ;;  %v1119_v28 = vsel %vm518_vm0, %v4284_v6, 0 }
  0x6d   : > { %3533 = vmatmul.mubr.msk.bf16.vlgmr.msra.gmra.mrb[0].mxu0 %vm493_vm3, %v3772_v57  ;;  %v2124_v57 = vshll.u32 %v3187_v61, 16  ;;  %v3778_v40 = vld [vmem:[%s3910_s5 + $0x54] sm:$0xff]  }
  0x6e   : > { %3549 = vmatpush3.bf16.msra.mxu0 %v2339_v18  ;;  %3536 = vmatprep.mubr.msk.bf16.mxu0 %vm493_vm3, %v3774_v4  ;;  %v2145_v18 = vshrl.u32 %v3190_v55, 16  ;;  %v3022_v4 = vrot.slane %v790_v44, 9 }
  0x6f   : > { %3451 = vmatmul.mubr.msk.bf16.gmra.mrb[8].mxu1 %vm493_vm3, %v3004_v22  ;;  %3723 = vmatprep.subr.msk.bf16.mxu0 %vm518_vm0, %v4383_v38  ;;  %v2121_v22 = vshrl.u32 %v3187_v61, 16  ;;  %v863_v61 = vrot.slane %v861_v15, 4  ;;  %v2126_v54 = vrot.slane %v2124_v57, 5  ;;  %v2160_v57 = vrot.slane %v2158_v34, 4  ;;  %v3196_v34 = vld [vmem:[%s3910_s5 + $0x48] sm:$0xf] }
  0x70   : > { %3454 = vmatprep.mubr.msk.bf16.mxu1 %vm493_vm3, %v3005_v56  ;;  %v2148_v56 = vshll.u32 %v3190_v55, 16  ;;  %v4438_v19 = vsel %vm4104_vm7, %v3022_v4, %v861_v15  ;;  %v2136_v55 = vrot.slane %v2134_v43, 4  ;;  %v2147_v44 = vrot.slane %v2145_v18, 4  ;;  %v4464_v43 = vld [vmem:[%s3910_s5 + $0x40] sm:$0xf] }
  0x71   : > { %v2123_v39 = vrot.slane %v2121_v22, 4  ;;  %v4455_v22 = vrot.slane %v2154_v48, 5  ;;  %v3779_v18 = vld [vmem:[%s3910_s5 + $0x60] sm:$0xff]   ;;  %v2119_v4 = vsel %vm3949_vm4, %v2114_v37, %v2118_v52  ;;  %v2140_v48 = vshll.u32 %v4446_v36, 16 }
  0x72   : > { %v2193_v52 = vshrl.u32 %v3196_v34, 16  ;;  %v2196_v37 = vshll.u32 %v3196_v34, 16 }
  0x73   : > { %v2127_v15 = vor.u32 %v2126_v54, %v2123_v39  ;;  %v2161_v63 = vor.u32 %v2160_v57, %v4455_v22  ;;  %v3199_v57 = vld [vmem:[%s3910_s5 + $0x54] sm:$0xf] }
  0x74   : > { %v2195_v50 = vrot.slane %v2193_v52, 4  ;;  %v2220_v34 = vshll.u32 %v3199_v57, 16 }
  0x75   : > { %3537 = vmatmul.mubr.msk.bf16.gmra.mrb[4].mxu0 %vm493_vm3, %v3776_v20  ;;  %v2150_v20 = vrot.slane %v2148_v56, 5  ;;  %v2109_v56 = vsel %vm3949_vm4, %v2104_v53, %v4397_v11  ;;  %v2178_v11 = vshll.u32 %v4464_v43, 16  ;;  %v2182_v53 = vshrl.u32 %v4464_v43, 16 }
  0x76   : > { %3540 = vmatprep.mubr.msk.bf16.mxu0 %vm493_vm3, %v3777_v1  ;;  %v2164_v1 = vshll.u32 %v4453_v21, 16  ;;  %v3209_v54 = vcombine.low %v2109_v56, %v2119_v4  ;;  %v2162_v56 = vrot.slane %v2161_v63, 4  ;;  %v4511_v63 = vld [vmem:[%s3910_s5 + $0x50] sm:$0x1] }
  0x77   : > { %3455 = vmatmul.mubr.msk.bf16.gmra.mrb[12].mxu1 %vm493_vm3, %v3006_v10  ;;  %v4450_v10 = vsel %vm4104_vm7, %v863_v61, %v864_v16  ;;  %v4475_v16 = vld [vmem:[%s3910_s5 + $0x4c] sm:$0xf]  ;;  %v2137_v61 = vor.u32 %v2136_v55, %v4442_v26  ;;  %v2151_v6 = vor.u32 %v2150_v20, %v2147_v44  ;;  %v2128_v55 = vrot.slane %v2127_v15, 4 }
  0x78   : > { %3460 = vmatprep.mubr.msk.bf16.mxu1 %vm493_vm3, %v3024_v41  ;;  %v3193_v41 = vld [vmem:[%s3910_s5 + $0x3c] sm:$0xf]  ;;  %v2202_v39 = vshll.u32 %v4475_v16, 16  ;;  %v2142_v44 = vrot.slane %v2140_v48, 5  ;;  %v2206_v20 = vshrl.u32 %v4475_v16, 16  ;;  %v2166_v33 = vrot.slane %v2164_v1, 5 }
  0x79   : > { %v2169_v49 = vshrl.u32 %v3193_v41, 16  ;;  %v2172_v13 = vshll.u32 %v3193_v41, 16  ;;  %v2138_v41 = vrot.slane %v2137_v61, 4  ;;  %v4499_v15 = vrot.slane %v2178_v11, 5 }
  0x7a   : > { %v2184_v48 = vrot.slane %v2182_v53, 4  ;;  %v2217_v1 = vshrl.u32 %v3199_v57, 16  ;;  %v1388_v11 = vshll.u32 %v4225_v59, 16  ;;  %v2133_v53 = vsel %vm3949_vm4, %v2128_v55, %v4442_v26 }
  0x7b   : > { %v2171_v25 = vrot.slane %v2169_v49, 4  ;;  %v2174_v4 = vrot.slane %v2172_v13, 5  ;;  %v4508_v49 = vrot.slane %v2202_v39, 5  ;;  %v2208_v13 = vrot.slane %v2206_v20, 4 }
  0x7c   : > { %v2143_v52 = vsel %vm3949_vm4, %v2138_v41, %v2142_v44  ;;  %v2185_v57 = vor.u32 %v2184_v48, %v4499_v15  ;;  %v2167_v26 = vsel %vm3949_vm4, %v2162_v56, %v2166_v33  ;;  %v2219_v44 = vrot.slane %v2217_v1, 4  ;;  %v4549_v56 = vld [vmem:[%s3910_s5 + $0x5c] sm:$0x1] }
  0x7d   : > { %3541 = vmatmul.mubr.msk.bf16.gmra.mrb[8].mxu0 %vm493_vm3, %v3778_v40  ;;  %v2152_v40 = vrot.slane %v2151_v6, 4  ;;  %v2175_v20 = vor.u32 %v2174_v4, %v2171_v25  ;;  %v2209_v41 = vor.u32 %v2208_v13, %v4508_v49  ;;  %v4815_v33 = vcombine.low %v4335_v2, %v4350_v9 }
  0x7e   : > { %3544 = vmatprep.mubr.msk.bf16.mxu0 %vm493_vm3, %v3779_v18  ;;  %v3780_v18 = vld [vmem:[%s3910_s5 + $0x6c] sm:$0xff]   ;;  %v2241_v4 = vshrl.u32 %v3202_v7, 16  ;;  %v1392_v48 = vshrl.u32 %v4225_v59, 16  ;;  %v3210_v13 = vcombine.low %v2133_v53, %v2143_v52 }
  0x7f   : > { %3461 = vmatmul.mubr.msk.bf16.vlgmr.msra.gmra.mrb[0].mxu1 %vm493_vm3, %v3025_v27  ;;  %v4496_v27 = vld [vmem:[%s3910_s5 + $0x58] sm:$0xf]  ;;  %v2157_v39 = vsel %vm3949_vm4, %v2152_v40, %v4455_v22  ;;  %v4814_v22 = vcombine.low %v4329_v58, %v4341_v23  ;;  %v2222_v40 = vrot.slane %v2220_v34, 5  ;;  %v2244_v58 = vshll.u32 %v3202_v7, 16 }
  0x80   : > { %3477 = vmatpush3.bf16.msra.mxu1 %v1119_v28  ;;  %3464 = vmatprep.mubr.msk.bf16.mxu1 %vm493_vm3, %v3026_v29  ;;  %v3789_v28 = vld [vmem:[%s4798_s1 + $0x8] sm:$0x3]  ;;  %v2198_v29 = vrot.slane %v2196_v37, 5  ;;  %v2226_v61 = vshll.u32 %v4496_v27, 16  ;;  %v2230_v6 = vshrl.u32 %v4496_v27, 16  ;;  %v2593_v37 = vsel %vm518_vm0, %v4383_v38, 0 }
  0x81   : > { %3719 = vmatprep.subr.msk.bf16.mxu1 %vm518_vm0, %v3789_v28  ;;  %v2188_v28 = vshll.u32 %v4506_v46, 16  ;;  %v2212_v38 = vshll.u32 %v4511_v63, 16  ;;  %v2250_v23 = vshll.u32 %v4530_v60, 16  ;;  %v3211_v34 = vcombine.low %v2157_v39, %v2167_v26 }
  0x82   : > { %v2199_v55 = vor.u32 %v2198_v29, %v2195_v50  ;;  %v4542_v25 = vrot.slane %v2226_v61, 5  ;;  %v2176_v50 = vrot.slane %v2175_v20, 4  ;;  %v2186_v29 = vrot.slane %v2185_v57, 4 }
  0x83   : > { %v2190_v1 = vrot.slane %v2188_v28, 5  ;;  %v2214_v9 = vrot.slane %v2212_v38, 5  ;;  %v2210_v61 = vrot.slane %v2209_v41, 4  ;;  %v2236_v7 = vshll.u32 %v4549_v56, 16  ;;  %v4570_v28 = vld [vmem:[%s3910_s5 + $0x68] sm:$0x1] }
  0x84   : > { %v2200_v2 = vrot.slane %v2199_v55, 4  ;;  %v2243_v35 = vrot.slane %v2241_v4, 4  ;;  %v4560_v59 = vrot.slane %v2250_v23, 5  ;;  %v4562_v57 = vrot.slane %v1388_v11, 5 }
  0x85   : > { %3545 = vmatmul.mubr.msk.bf16.gmra.mrb[12].mxu0 %vm493_vm3, %v3780_v18  ;;  %v2232_v18 = vrot.slane %v2230_v6, 4  ;;  %v2223_v6 = vor.u32 %v2222_v40, %v2219_v44  ;;  %v1394_v53 = vrot.slane %v1392_v48, 4  ;;  %v2181_v52 = vsel %vm3949_vm4, %v2176_v50, %v4499_v15 }
  0x86   : > { %3550 = vmatprep.mubr.msk.bf16.mxu0 %vm493_vm3, %v3209_v54  ;;  %v2254_v54 = vshrl.u32 %v4530_v60, 16  ;;  %v2246_v60 = vrot.slane %v2244_v58, 5  ;;  %v2191_v39 = vsel %vm3949_vm4, %v2186_v29, %v2190_v1  ;;  %v2274_v38 = vshll.u32 %v4558_v12, 16  ;;  %v3781_v1 = vld [vmem:[%s3910_s5 + $0xc] sm:$0xff]  }
  0x87   : > { %3465 = vmatmul.mubr.msk.bf16.gmra.mrb[4].mxu1 %vm493_vm3, %v4814_v22  ;;  %v2233_v22 = vor.u32 %v2232_v18, %v4542_v25  ;;  %v2278_v44 = vshrl.u32 %v4558_v12, 16  ;;  %v4816_v11 = vcombine.low %v4369_v47, %v4387_v51  ;;  %v2205_v15 = vsel %vm3949_vm4, %v2200_v2, %v4508_v49 }
  0x88   : > { %3468 = vmatprep.mubr.msk.bf16.mxu1 %vm493_vm3, %v4815_v33  ;;  %v3205_v33 = vld [vmem:[%s3910_s5 + $0x6c] sm:$0xf]  ;;  %v2256_v20 = vrot.slane %v2254_v54, 4  ;;  %v2215_v41 = vsel %vm3949_vm4, %v2210_v61, %v2214_v9  ;;  %v2224_v40 = vrot.slane %v2223_v6, 4  ;;  %v2238_v18 = vrot.slane %v2236_v7, 5 }
  0x89   : > { %v2265_v26 = vshrl.u32 %v3205_v33, 16  ;;  %v2268_v55 = vshll.u32 %v3205_v33, 16  ;;  %v4817_v4 = vcombine.low %v4408_v62, %v4420_v24  ;;  %v2234_v47 = vrot.slane %v2233_v22, 4  ;;  %v3090_v22 = vld [vmem:[%s3910_s5 + $0x48] sm:$0xf] }
  0x8a   : > { %v2247_v51 = vor.u32 %v2246_v60, %v2243_v35  ;;  %v2260_v49 = vshll.u32 %v4570_v28, 16  ;;  %v1395_v58 = vor.u32 %v1394_v53, %v4562_v57  ;;  %v1398_v23 = vshll.u32 %v4228_v0, 16  ;;  %v4599_v60 = vld [vmem:[%s3910_s5 + $0x74] sm:$0x1] }
  0x8b   : > { %v3212_v54 = vcombine.low %v2181_v52, %v2191_v39  ;;  %v2267_v48 = vrot.slane %v2265_v26, 4  ;;  %v2270_v62 = vrot.slane %v2268_v55, 5  ;;  %v4593_v24 = vrot.slane %v2274_v38, 5 }
  0x8c   : > { %v2280_v50 = vrot.slane %v2278_v44, 4  ;;  %v3213_v29 = vcombine.low %v2205_v15, %v2215_v41  ;;  %v2229_v35 = vsel %vm3949_vm4, %v2224_v40, %v4542_v25  ;;  %v2248_v0 = vrot.slane %v2247_v51, 4  ;;  %v3783_v51 = vld [vmem:[%s3910_s5 + $0x24] sm:$0xff]  }
  0x8d   : > { %3551 = vmatmul.mubr.msk.bf16.vlgmr.msra.gmra.mrb[0].mxu0 %vm493_vm3, %v3210_v13  ;;  %v2239_v13 = vsel %vm3949_vm4, %v2234_v47, %v2238_v18  ;;  %v2262_v2 = vrot.slane %v2260_v49, 5  ;;  %v1396_v9 = vrot.slane %v1395_v58, 4  ;;  %v1400_v61 = vrot.slane %v1398_v23, 5 }
  0x8e   : > { %3567 = vmatpush3.bf16.msra.mxu0 %v2593_v37  ;;  %3554 = vmatprep.mubr.msk.bf16.mxu0 %vm493_vm3, %v3211_v34  ;;  %v2257_v37 = vor.u32 %v2256_v20, %v4560_v59  ;;  %v2488_v6 = vrot.slane %v4357_v31, 5  ;;  %v2271_v7 = vor.u32 %v2270_v62, %v2267_v48  ;;  %v2281_v33 = vor.u32 %v2280_v50, %v4593_v24  ;;  %v3225_v20 = vld [vmem:[%s3910_s5 + $0x18] sm:$0xe]  ;;  %v3227_v62 = vld [vmem:[%s3910_s5 + $0x30] sm:$0xe] }
  0x8f   : > { %3469 = vmatmul.mubr.msk.bf16.gmra.mrb[8].mxu1 %vm493_vm3, %v4816_v11  ;;  %v2284_v25 = vshll.u32 %v4599_v60, 16  ;;  %v4818_v53 = vcombine.low %v4438_v19, %v4450_v10  ;;  %v3214_v52 = vcombine.low %v2229_v35, %v2239_v13  ;;  %v2253_v31 = vsel %vm3949_vm4, %v2248_v0, %v4560_v59  ;;  %v3782_v59 = vld [vmem:[%s3910_s5 + $0x18] sm:$0xff]  }
  0x90   : > { %3472 = vmatprep.mubr.msk.bf16.mxu1 %vm493_vm3, %v4817_v4  ;;  %v2258_v34 = vrot.slane %v2257_v37, 4  ;;  %v1379_v26 = vshrl.u32 %v3090_v22, 16  ;;  %v1382_v55 = vshll.u32 %v3090_v22, 16  ;;  %v3233_v19 = vrot.slane %v3225_v20, 9  ;;  %v3087_v4 = vld [vmem:[%s3910_s5 + $0x3c] sm:$0xf] }
  0x91   : > { %v2490_v10 = vrot.slane %v2488_v6, 4  ;;  %v2491_v38 = vrot.slane %v4391_v30, 5  ;;  %v1401_v44 = vsel %vm3949_vm4, %v1396_v9, %v1400_v61  ;;  %v2272_v11 = vrot.slane %v2271_v7, 4  ;;  %v3226_v30 = vld [vmem:[%s3910_s5 + $0x24] sm:$0xe]  ;;  %v3784_v22 = vld [vmem:[%s3910_s5 + $0x30] sm:$0xff]  }
  0x92   : > { %v2263_v39 = vsel %vm3949_vm4, %v2258_v34, %v2262_v2  ;;  %v2282_v15 = vrot.slane %v2281_v33, 4  ;;  %v2286_v41 = vrot.slane %v2284_v25, 5  ;;  %v1381_v40 = vrot.slane %v1379_v26, 4  ;;  %v3785_v20 = vld [vmem:[%s3910_s5 + $0x3c] sm:$0xff]   ;;  %v3093_v26 = vld [vmem:[%s3910_s5 + $0x54] sm:$0xf] }
  0x93   : > { %v3215_v18 = vcombine.low %v2253_v31, %v2263_v39  ;;  %v1384_v47 = vrot.slane %v1382_v55, 5  ;;  %v2489_v37 = vsel %vm4104_vm7, %v3233_v19, %v2488_v6  ;;  %v2492_v49 = vsel %vm4104_vm7, %v2490_v10, %v2491_v38  ;;  %v3229_v38 = vld [vmem:[%s3910_s5 + $0x48] sm:$0xe] }
  0x94   : > { %v2495_v58 = vrot.slane %v4404_v14, 5  ;;  %v2287_v48 = vsel %vm3949_vm4, %v2282_v15, %v2286_v41  ;;  %v2502_v50 = vrot.slane %v4423_v8, 5  ;;  %v1358_v35 = vshll.u32 %v3087_v4, 16 }
  0x95   : > { %3555 = vmatmul.mubr.msk.bf16.gmra.mrb[4].mxu0 %vm493_vm3, %v3212_v54  ;;  %v1385_v23 = vor.u32 %v1384_v47, %v1381_v40  ;;  %v2277_v54 = vsel %vm3949_vm4, %v2272_v11, %v4593_v24  ;;  %v1364_v14 = vshll.u32 %v4207_v42, 16  ;;  %v3234_v24 = vrot.slane %v3226_v30, 9 }
  0x96   : > { %3558 = vmatprep.mubr.msk.bf16.mxu0 %vm493_vm3, %v3213_v29  ;;  %v1355_v29 = vshrl.u32 %v3087_v4, 16  ;;  %v2498_v8 = vrot.slane %v4446_v36, 5  ;;  %v3242_v0 = vcombine.low %v2489_v37, %v2492_v49  ;;  %v2497_v34 = vrot.slane %v2495_v58, 4  ;;  %v3786_v37 = vld [vmem:[%s3910_s5 + $0x48] sm:$0xff]  }
  0x97   : > { %3473 = vmatmul.mubr.msk.bf16.gmra.mrb[12].mxu1 %vm493_vm3, %v4818_v53  ;;  %v1386_v13 = vrot.slane %v1385_v23, 4  ;;  %v3235_v2 = vrot.slane %v3227_v62, 9  ;;  %v3216_v61 = vcombine.low %v2277_v54, %v2287_v48  ;;  %v2504_v6 = vrot.slane %v2502_v50, 4  ;;  %v3787_v23 = vld [vmem:[%s3910_s5 + $0x54] sm:$0xff]  }
  0x98   : > { %3478 = vmatprep.mubr.msk.bf16.mxu1 %vm493_vm3, %v3781_v1  ;;  %v1368_v1 = vshrl.u32 %v4207_v42, 16  ;;  %v2505_v42 = vrot.slane %v4453_v21, 5  ;;  %v1357_v7 = vrot.slane %v1355_v29, 4  ;;  %v1360_v33 = vrot.slane %v1358_v35, 5 }
  0x99   : > { %v1391_v9 = vsel %vm3949_vm4, %v1386_v13, %v4562_v57  ;;  %v4655_v25 = vrot.slane %v1364_v14, 5  ;;  %v2496_v53 = vsel %vm4104_vm7, %v3234_v24, %v2495_v58  ;;  %v2499_v57 = vsel %vm4104_vm7, %v2497_v34, %v2498_v8  ;;  %v3230_v24 = vld [vmem:[%s3910_s5 + $0x54] sm:$0xe]  ;;  %v4819_v8 = vld [vmem:[#allocation5_spill] sm:$0xff] }
  0x9a   : > { %v1370_v36 = vrot.slane %v1368_v1, 4  ;;  %v2503_v21 = vsel %vm4104_vm7, %v3235_v2, %v2502_v50  ;;  %v2509_v31 = vrot.slane %v4464_v43, 5  ;;  %v1374_v39 = vshll.u32 %v4210_v45, 16  ;;  %v3096_v50 = vld [vmem:[%s3910_s5 + $0x60] sm:$0xf] }
  0x9b   : > { %v2506_v55 = vsel %vm4104_vm7, %v2504_v6, %v2505_v42  ;;  %v1361_v19 = vor.u32 %v1360_v33, %v1357_v7  ;;  %v3243_v43 = vcombine.low %v2496_v53, %v2499_v57  ;;  %v2512_v11 = vrot.slane %v4506_v46, 5  ;;  %v4821_v33 = vld [vmem:[#allocation2_spill] sm:$0xff] }
  0x9c   : > { %v1371_v10 = vor.u32 %v1370_v36, %v4655_v25  ;;  %v1403_v15 = vshrl.u32 %v3093_v26, 16  ;;  %v1406_v41 = vshll.u32 %v3093_v26, 16  ;;  %v1412_v40 = vshll.u32 %v4236_v17, 16 }
  0x9d   : > { %3559 = vmatmul.mubr.msk.bf16.gmra.mrb[8].mxu0 %vm493_vm3, %v3214_v52  ;;  %v3228_v52 = vld [vmem:[%s3910_s5 + $0x3c] sm:$0xe]  ;;  %v2511_v4 = vrot.slane %v2509_v31, 4  ;;  %v1376_v47 = vrot.slane %v1374_v39, 5  ;;  %v2519_v58 = vrot.slane %v4511_v63, 5  ;;  %v2523_v63 = vrot.slane %v4496_v27, 5 }
  0x9e   : > { %3562 = vmatprep.mubr.msk.bf16.mxu0 %vm493_vm3, %v3215_v18  ;;  %v3236_v45 = vrot.slane %v3228_v52, 9  ;;  %v3244_v18 = vcombine.low %v2503_v21, %v2506_v55  ;;  %v1372_v49 = vrot.slane %v1371_v10, 4  ;;  %v1405_v46 = vrot.slane %v1403_v15, 4  ;;  %v3231_v27 = vld [vmem:[%s3910_s5 + $0x60] sm:$0xe] }
  0x9f   : > { %3479 = vmatmul.mubr.msk.bf16.vlgmr.msra.gmra.mrb[0].mxu1 %vm493_vm3, %v3782_v59  ;;  %v1416_v59 = vshrl.u32 %v4236_v17, 16  ;;  %v1408_v54 = vrot.slane %v1406_v41, 5  ;;  %v1414_v48 = vrot.slane %v1412_v40, 5  ;;  %v2513_v29 = vsel %vm4104_vm7, %v2511_v4, %v2512_v11  ;;  %v3788_v52 = vld [vmem:[%s3910_s5 + $0x60] sm:$0xff]  }
  0xa0   : > { %3585 = vmatpush3.bf16.msra.mxu1 %v3892_v3  ;;  %3482 = vmatprep.mubr.msk.bf16.mxu1 %vm493_vm3, %v3783_v51  ;;  %v4652_v3 = vcombine.low %v1391_v9, %v1401_v44  ;;  %v2516_v44 = vrot.slane %v4475_v16, 5  ;;  %v3237_v51 = vrot.slane %v3229_v38, 9  ;;  %v1362_v16 = vrot.slane %v1361_v19, 4  ;;  %v4820_v9 = vld [vmem:[#allocation3_spill] sm:$0xff] }
  0xa1   : > { %v1418_v62 = vrot.slane %v1416_v59, 4  ;;  %v2510_v17 = vsel %vm4104_vm7, %v3236_v45, %v2509_v31  ;;  %v1377_v1 = vsel %vm3949_vm4, %v1372_v49, %v1376_v47  ;;  %v1427_v34 = vshrl.u32 %v3096_v50, 16  ;;  %v3232_v47 = vld [vmem:[%s3910_s5 + $0x6c] sm:$0xe]  ;;  %s4760_s5 = scalar_lea.vmem %s4800_s3, %s2978_s12 }
  0xa2   : > { %v2518_v30 = vrot.slane %v2516_v44, 4  ;;  %v2517_v35 = vsel %vm4104_vm7, %v3237_v51, %v2516_v44  ;;  %v1367_v14 = vsel %vm3949_vm4, %v1362_v16, %v4655_v25  ;;  %v1430_v2 = vshll.u32 %v3096_v50, 16 }
  0xa3   : > { %v1440_v6 = vshrl.u32 %v4820_v9, 16  ;;  %v3245_v42 = vcombine.low %v2510_v17, %v2513_v29  ;;  %v1419_v7 = vor.u32 %v1418_v62, %v1414_v48  ;;  %v1422_v25 = vshll.u32 %v4821_v33, 16 }
  0xa4   : > { %v2520_v13 = vsel %vm4104_vm7, %v2518_v30, %v2519_v58  ;;  %v2525_v53 = vrot.slane %v2523_v63, 4  ;;  %v2526_v57 = vrot.slane %v4549_v56, 5  ;;  %v3104_v21 = vcombine.low %v1367_v14, %v1377_v1 }
  0xa5   : > { %3563 = vmatmul.mubr.msk.bf16.gmra.mrb[12].mxu0 %vm493_vm3, %v3216_v61  ;;  %v1436_v61 = vshll.u32 %v4820_v9, 16  ;;  %v3246_v36 = vcombine.low %v2517_v35, %v2520_v13  ;;  %v3239_v31 = vrot.slane %v3231_v27, 9  ;;  %v2533_v26 = vrot.slane %v4570_v28, 5 }
  0xa6   : > { %3568 = vmatprep.mubr.msk.bf16.mxu0 %vm493_vm3, %v3242_v0  ;;  %v2530_v0 = vrot.slane %v4819_v8, 5  ;;  %v1429_v55 = vrot.slane %v1427_v34, 4  ;;  %v1432_v19 = vrot.slane %v1430_v2, 5  ;;  %v1442_v38 = vrot.slane %v1440_v6, 4 }
  0xa7   : > { %3483 = vmatmul.mubr.msk.bf16.gmra.mrb[4].mxu1 %vm493_vm3, %v3784_v22  ;;  %v1409_v22 = vor.u32 %v1408_v54, %v1405_v46  ;;  %v1438_v10 = vrot.slane %v1436_v61, 5  ;;  %v1424_v45 = vrot.slane %v1422_v25, 5  ;;  %v2527_v28 = vsel %vm4104_vm7, %v2525_v53, %v2526_v57 }
  0xa8   : > { %3486 = vmatprep.mubr.msk.bf16.mxu1 %vm493_vm3, %v3785_v20  ;;  %v3238_v20 = vrot.slane %v3230_v24, 9  ;;  %v2532_v39 = vrot.slane %v2530_v0, 4  ;;  %v2531_v11 = vsel %vm4104_vm7, %v3239_v31, %v2530_v0  ;;  %v2537_v15 = vrot.slane %v4558_v12, 5  ;;  %v4751_v0 = vld [vmem:[%s4799_s2] ss:$0 sm:$0xff] }
  0xa9   : > { %v1410_v44 = vrot.slane %v1409_v22, 4  ;;  %v1433_v40 = vor.u32 %v1432_v19, %v1429_v55  ;;  %v1443_v59 = vor.u32 %v1442_v38, %v1438_v10  ;;  %v3240_v30 = vrot.slane %v3232_v47, 9 }
  0xaa   : > { %v2524_v56 = vsel %vm4104_vm7, %v3238_v20, %v2523_v63  ;;  %v2534_v41 = vsel %vm4104_vm7, %v2532_v39, %v2533_v26  ;;  %v2539_v12 = vrot.slane %v2537_v15, 4  ;;  %v2540_v58 = vrot.slane %v4599_v60, 5 }
  0xab   : > { %v1415_v51 = vsel %vm3949_vm4, %v1410_v44, %v1414_v48  ;;  %v3247_v16 = vcombine.low %v2524_v56, %v2527_v28  ;;  %v3248_v49 = vcombine.low %v2531_v11, %v2534_v41  ;;  %v1434_v46 = vrot.slane %v1433_v40, 4 }
  0xac   : > { %v1444_v54 = vrot.slane %v1443_v59, 4  ;;  %v2538_v48 = vsel %vm4104_vm7, %v3240_v30, %v2537_v15  ;;  %v2541_v50 = vsel %vm4104_vm7, %v2539_v12, %v2540_v58 }
  0xad   : > { %3569 = vmatmul.mubr.msk.bf16.vlgmr.msra.gmra.mrb[0].mxu0 %vm493_vm3, %v3243_v43  ;;  %v1420_v43 = vrot.slane %v1419_v7, 4  ;;  %v1439_v60 = vsel %vm3949_vm4, %v1434_v46, %v1438_v10  ;;  %v3249_v29 = vcombine.low %v2538_v48, %v2541_v50 }
  0xae   : > { %3572 = vmatprep.mubr.msk.bf16.mxu0 %vm493_vm3, %v3244_v18  ;;  %v4822_v18 = vld [vmem:[#allocation4_spill] sm:$0xff] }
  0xaf   : > { %3487 = vmatmul.mubr.msk.bf16.gmra.mrb[8].mxu1 %vm493_vm3, %v3786_v37  ;;  %v1446_v4 = vshll.u32 %v4822_v18, 16  ;;  %v1425_v37 = vsel %vm3949_vm4, %v1420_v43, %v1424_v45 }
  0xb0   : > { %3490 = vmatprep.mubr.msk.bf16.mxu1 %vm493_vm3, %v3787_v23  ;;  %v3106_v23 = vcombine.low %v1415_v51, %v1425_v37 }
  0xb1   : > { %v1448_v62 = vrot.slane %v1446_v4, 5 }
  0xb3   : > { %v1449_v17 = vsel %vm3949_vm4, %v1444_v54, %v1448_v62 }
  0xb4   : > { %v3107_v35 = vcombine.low %v1439_v60, %v1449_v17 }
  0xb5   : > { %3573 = vmatmul.mubr.msk.bf16.gmra.mrb[4].mxu0 %vm493_vm3, %v3245_v42 }
  0xb6   : > { %3576 = vmatprep.mubr.msk.bf16.mxu0 %vm493_vm3, %v3246_v36 }
  0xb7   : > { %3491 = vmatmul.mubr.msk.bf16.gmra.mrb[12].mxu1 %vm493_vm3, %v3788_v52 }
  0xb8   : > { %3504 = vmatprep.mubr.msk.bf16.mxu1 %vm493_vm3, %v3104_v21 }
  0xbd   : > { %3577 = vmatmul.mubr.msk.bf16.gmra.mrb[8].mxu0 %vm493_vm3, %v3247_v16 }
  0xbe   : > { %3580 = vmatprep.mubr.msk.bf16.mxu0 %vm493_vm3, %v3248_v49 }
  0xbf   : > { %3505 = vmatmul.mubr.msk.bf16.vlgmr.msra.gmra.mrb[8].mxu1 %vm493_vm3, %v4652_v3 }
  0xc0   : > { %3508 = vmatprep.mubr.msk.bf16.mxu1 %vm493_vm3, %v3106_v23 }
  0xc5   : > { %3581 = vmatmul.mubr.msk.bf16.gmra.mrb[12].mxu0 %vm493_vm3, %v3249_v29 }
  0xc7   : > { %3509 = vmatmul.mubr.msk.bf16.gmra.mrb[12].mxu1 %vm493_vm3, %v3107_v35 }
 0x172   : > { %v3480_v3 = vpop.f32.mrb[0].mxu1 }
 0x173   : > { %v1155_v63 = vpop.f32.mrb[1].mxu1 }
 0x174   : > { %v3481_v14 = vpop.f32.mrb[2].mxu1 }
 0x175   : > { %v1158_v5 = vpop.f32.mrb[3].mxu1 }
 0x17a   : > { %v3484_v1 = vpop.f32.mrb[4].mxu1 }
 0x17b   : > { %v1171_v13 = vpop.f32.mrb[5].mxu1 }
 0x17c   : > { %v3485_v24 = vpop.f32.mrb[6].mxu1 }
 0x17d   : > { %v1174_v8 = vpop.f32.mrb[7].mxu1 }
 0x180   : > { %v3570_v32 = vpop.f32.mrb[0].mxu0 }
 0x181   : > { %v3586_v27 = vadd.f32 %v3570_v32, %v3480_v3  ;;  %v2629_v34 = vpop.f32.mrb[1].mxu0 }
 0x182   : > { %v3587_v2 = vadd.f32 %v2629_v34, %v1155_v63  ;;  %v3571_v9 = vpop.f32.mrb[2].mxu0 }
 0x183   : > { %v2717_v61 = vadd.f32 %v3586_v27, %v4751_v0  ;;  %v3588_v6 = vadd.f32 %v3571_v9, %v3481_v14  ;;  %v2632_v42 = vpop.f32.mrb[3].mxu0 }
 0x184   : > { %v2715_v22 = vadd.f32 %v3587_v2, %v4751_v0  ;;  %v3589_v7 = vadd.f32 %v2632_v42, %v1158_v5 }
 0x185   : > { %v2718_v33 = vadd.f32 %v3588_v6, %v4751_v0  ;;  %v2733_v36 = vmax.f32 %v2717_v61, 0.0 }
 0x186   : > { %v2716_v25 = vadd.f32 %v3589_v7, %v4751_v0  ;;  %v2731_v53 = vmax.f32 %v2715_v22, 0.0 }
 0x187   : > { %v2734_v20 = vmax.f32 %v2718_v33, 0.0 }
 0x188   : > { %v2732_v57 = vmax.f32 %v2716_v25, 0.0  ;;  %v3574_v52 = vpop.f32.mrb[4].mxu0 }
 0x189   : > { %v3302_v21 = vpack.c.bf16 %v2734_v20, %v2733_v36  ;;  %v3590_v31 = vadd.f32 %v3574_v52, %v3484_v1  ;;  %v2645_v39 = vpop.f32.mrb[5].mxu0 }
 0x18a   : > { %v3297_v26 = vpack.c.bf16 %v2732_v57, %v2731_v53  ;;  %v3591_v55 = vadd.f32 %v2645_v39, %v1171_v13  ;;  %v3575_v19 = vpop.f32.mrb[6].mxu0 }
 0x18b   : > { %3334 = vst [vmem:[%s4760_s5 + $0x8] sm:$0xff] %v3302_v21   ;;  %v2721_v10 = vadd.f32 %v3590_v31, %v4751_v0  ;;  %v3592_v38 = vadd.f32 %v3575_v19, %v3485_v24  ;;  %v2648_v44 = vpop.f32.mrb[7].mxu0 }
 0x18c   : > { %3298 = vst [vmem:[%s4760_s5] sm:$0xff] %v3297_v26   ;;  %v2719_v43 = vadd.f32 %v3591_v55, %v4751_v0  ;;  %v3593_v45 = vadd.f32 %v2648_v44, %v1174_v8 }
 0x18d   : > { %v2722_v56 = vadd.f32 %v3592_v38, %v4751_v0  ;;  %v2737_v11 = vmax.f32 %v2721_v10, 0.0 }
 0x18e   : > { %v2720_v28 = vadd.f32 %v3593_v45, %v4751_v0  ;;  %v2735_v41 = vmax.f32 %v2719_v43, 0.0 }
 0x18f   : > { %v2738_v15 = vmax.f32 %v2722_v56, 0.0 }
 0x190   : > { %v2736_v40 = vmax.f32 %v2720_v28, 0.0  ;;  %v3578_v59 = vpop.f32.mrb[8].mxu0 }
 0x191   : > { %v3312_v18 = vpack.c.bf16 %v2738_v15, %v2737_v11  ;;  %v2661_v47 = vpop.f32.mrb[9].mxu0 }
 0x192   : > { %v3506_v4 = vpop.f32.mrb[8].mxu1  ;;  %v3307_v51 = vpack.c.bf16 %v2736_v40, %v2735_v41  ;;  %v3579_v49 = vpop.f32.mrb[10].mxu0 }
 0x193   : > { %v3594_v37 = vadd.f32 %v3578_v59, %v3506_v4  ;;  %v1569_v16 = vpop.f32.mrb[9].mxu1  ;;  %3336 = vst [vmem:[%s4760_s5 + $0x18] sm:$0xff] %v3312_v18   ;;  %v2664_v58 = vpop.f32.mrb[11].mxu0 }
 0x194   : > { %v3595_v30 = vadd.f32 %v2661_v47, %v1569_v16  ;;  %v3507_v12 = vpop.f32.mrb[10].mxu1  ;;  %3335 = vst [vmem:[%s4760_s5 + $0x10] sm:$0xff] %v3307_v51  }
 0x195   : > { %v2725_v23 = vadd.f32 %v3594_v37, %v4751_v0  ;;  %v3596_v46 = vadd.f32 %v3579_v49, %v3507_v12  ;;  %v1572_v54 = vpop.f32.mrb[11].mxu1 }
 0x196   : > { %v2723_v62 = vadd.f32 %v3595_v30, %v4751_v0  ;;  %v3597_v48 = vadd.f32 %v2664_v58, %v1572_v54 }
 0x197   : > { %v2726_v50 = vadd.f32 %v3596_v46, %v4751_v0  ;;  %v2741_v17 = vmax.f32 %v2725_v23, 0.0 }
 0x198   : > { %v2724_v60 = vadd.f32 %v3597_v48, %v4751_v0  ;;  %v3582_v35 = vpop.f32.mrb[12].mxu0  ;;  %v2739_v3 = vmax.f32 %v2723_v62, 0.0 }
 0x199   : > { %v2742_v29 = vmax.f32 %v2726_v50, 0.0  ;;  %v2677_v5 = vpop.f32.mrb[13].mxu0 }
 0x19a   : > { %v2740_v63 = vmax.f32 %v2724_v60, 0.0  ;;  %v3510_v14 = vpop.f32.mrb[12].mxu1  ;;  %v3583_v8 = vpop.f32.mrb[14].mxu0 }
 0x19b   : > { %v3322_v1 = vpack.c.bf16 %v2742_v29, %v2741_v17  ;;  %v3598_v13 = vadd.f32 %v3582_v35, %v3510_v14  ;;  %v1585_v24 = vpop.f32.mrb[13].mxu1  ;;  %v2680_v2 = vpop.f32.mrb[15].mxu0 }
 0x19c   : > { %v3317_v32 = vpack.c.bf16 %v2740_v63, %v2739_v3  ;;  %v3599_v27 = vadd.f32 %v2677_v5, %v1585_v24  ;;  %v3511_v34 = vpop.f32.mrb[14].mxu1 }
 0x19d   : > { %3338 = vst [vmem:[%s4760_s5 + $0x28] sm:$0xff] %v3322_v1   ;;  %v2729_v9 = vadd.f32 %v3598_v13, %v4751_v0  ;;  %v3600_v61 = vadd.f32 %v3583_v8, %v3511_v34  ;;  %v1588_v6 = vpop.f32.mrb[15].mxu1 }
 0x19e   : > { %3337 = vst [vmem:[%s4760_s5 + $0x20] sm:$0xff] %v3317_v32   ;;  %v2727_v42 = vadd.f32 %v3599_v27, %v4751_v0  ;;  %v3601_v22 = vadd.f32 %v2680_v2, %v1588_v6 }
 0x19f   : > { %v2730_v7 = vadd.f32 %v3600_v61, %v4751_v0  ;;  %v2745_v25 = vmax.f32 %v2729_v9, 0.0 }
 0x1a0   : > { %v2728_v33 = vadd.f32 %v3601_v22, %v4751_v0  ;;  %v2743_v20 = vmax.f32 %v2727_v42, 0.0 }
 0x1a1   : > { %v2746_v36 = vmax.f32 %v2730_v7, 0.0 }
 0x1a2   : > { %v2744_v53 = vmax.f32 %v2728_v33, 0.0 }
 0x1a3   : > { %v3332_v57 = vpack.c.bf16 %v2746_v36, %v2745_v25 }
 0x1a4   : > { %v3327_v52 = vpack.c.bf16 %v2744_v53, %v2743_v20 }
 0x1a5   : > { %3340 = vst [vmem:[%s4760_s5 + $0x38] sm:$0xff] %v3332_v57  }
 0x1a6   : > { %3339 = vst [vmem:[%s4760_s5 + $0x30] sm:$0xff] %v3327_v52  }
 0x1a7 PF: > { %s13_s16 = sadd.s32 1, %s3828_s16   ;;  %s4823_s12 = smov %s3820_s14 }
 0x1a8   : > { %p10_p7 = scmp.ge.s32.totalorder %s13_s16, 6   ;;  %s4824_s13 = smov %s3824_s15 }
 0x1a9   : > { %s4825_s14 = smov %s4828_s17  ;;  %s4826_s15 = smov %s4832_s18 }
 0x1aa   :  { %12 = sbr.rel (!%p10_p7) target bundleno = 3 (0x3), region = 79 }

</bundles_post_ra>
